<compile_context>
chip_gen: v7x
topology: tpu7x:2x2x1
jax: 0.10.0
libtpu: 0.0.40
codegen_flags: <defaults>
</compile_context>

<pallas_src>
import functools

import jax
import jax.numpy as jnp
from jax import lax
from jax.experimental import pallas as pl
from jax.experimental.pallas import tpu as pltpu

DIM = 64
HEADS = 4
HD = DIM // HEADS
NEG_INF = -1e30

B = 2
S = 16


# ----------------------------- fused kernel ---------------------------------
def _alt_attention_kernel(x_ref, mask_ref, wqkv_ref, bqkv_ref, wproj_ref,
                          bproj_ref, o_ref, *, heads, scale):
    b, s, d = x_ref.shape
    hd = d // heads

    # ---- fused QKV projection over all B*S rows (one wide MXU matmul) -------
    x2 = jnp.concatenate([x_ref[i] for i in range(b)], axis=0)          # [B*S, D]
    qkv = jnp.dot(x2.astype(jnp.bfloat16), wqkv_ref[...],
                  preferred_element_type=jnp.float32) + bqkv_ref[...]   # [B*S, 3D]

    # ---- attention; heads split via static lane slices (no transposes) ------
    ctx_rows = []
    for bi in range(b):
        qkv_b = qkv[bi * s:(bi + 1) * s, :]                             # [S, 3D]
        # masked-softmax key bias: 0 where keep, -1e30 where masked
        bias_b = jnp.where(mask_ref[bi] > 0.5, 0.0, NEG_INF)            # [1, S]

        head_out = []
        for h in range(heads):
            q = qkv_b[:, h * hd:(h + 1) * hd].astype(jnp.bfloat16)              # [S, hd]
            k = qkv_b[:, d + h * hd:d + (h + 1) * hd].astype(jnp.bfloat16)      # [S, hd]
            v = qkv_b[:, 2 * d + h * hd:2 * d + (h + 1) * hd].astype(jnp.bfloat16)

            # scores = (q @ k^T) * dim**-0.5  (AltAttention scales by full dim)
            att = lax.dot_general(q, k, (((1,), (1,)), ((), ())),
                                  preferred_element_type=jnp.float32) * scale   # [S, S]
            att = att + bias_b                                                   # mask keys

            m = jnp.max(att, axis=-1, keepdims=True)
            p = jnp.exp(att - m)
            denom = jnp.maximum(jnp.sum(p, axis=-1, keepdims=True), 1e-30)
            p = p * pl.reciprocal(denom, approx=True)

            head_out.append(jnp.dot(p.astype(jnp.bfloat16), v,
                                    preferred_element_type=jnp.float32))         # [S, hd]
        ctx_rows.append(jnp.concatenate(head_out, axis=-1))                      # [S, D]
    ctx = jnp.concatenate(ctx_rows, axis=0)                                      # [B*S, D]

    # ---- output projection ---------------------------------------------------
    out = jnp.dot(ctx.astype(jnp.bfloat16), wproj_ref[...],
                  preferred_element_type=jnp.float32) + bproj_ref[...]           # [B*S, D]
    for bi in range(b):
        o_ref[bi] = out[bi * s:(bi + 1) * s, :].astype(o_ref.dtype)


def alt_attention(x, mask, params):
    """x: [B, S, D] float32; mask: [B, S] bool (True = keep) or None."""
    b, s, d = x.shape
    if mask is None:
        mask = jnp.ones((b, s), dtype=bool)
    maskf = mask.astype(jnp.float32).reshape(b, 1, s)

    kern = functools.partial(_alt_attention_kernel, heads=HEADS,
                             scale=float(d) ** (-0.5))
    return pl.pallas_call(
        kern,
        out_shape=jax.ShapeDtypeStruct((b, s, d), x.dtype),
        grid=(1,),
        in_specs=[
            pl.BlockSpec((b, s, d), lambda i: (0, 0, 0)),       # inputs
            pl.BlockSpec((b, 1, s), lambda i: (0, 0, 0)),       # mask (float)
            pl.BlockSpec((d, 3 * d), lambda i: (0, 0)),         # qkv weight (bf16)
            pl.BlockSpec((1, 3 * d), lambda i: (0, 0)),         # qkv bias
            pl.BlockSpec((d, d), lambda i: (0, 0)),             # proj weight (bf16)
            pl.BlockSpec((1, d), lambda i: (0, 0)),             # proj bias
        ],
        out_specs=pl.BlockSpec((b, s, d), lambda i: (0, 0, 0)),
        compiler_params=pltpu.CompilerParams(
            dimension_semantics=("arbitrary",)),
    )(x, maskf, params["wqkv"], params["bqkv"], params["wproj"], params["bproj"])


# ----------------------------- parameters -----------------------------------
def _qkv_column_permutation(dim, heads):
    # PyTorch AltAttention orders the qkv output channels head-major:
    #     c  = h * (3*hd) + g * hd + j      (g: 0=q, 1=k, 2=v)
    # The kernel wants them grouped [ q | k | v ], head-major inside each group:
    #     c' = g * dim + h * hd + j
    # Permuting the weight columns once at init makes the in-kernel head split a
    # plain static lane slice (no transposes / reshapes needed).
    hd = dim // heads
    perm = []
    for g in range(3):
        for h in range(heads):
            for j in range(hd):
                perm.append(h * 3 * hd + g * hd + j)
    return jnp.asarray(perm, dtype=jnp.int32)


def init_params(key, dim=DIM, heads=HEADS):
    k1, k2, k3, k4 = jax.random.split(key, 4)
    # Stored as [in, out] (transpose of PyTorch nn.Linear's [out, in]) so the
    # kernel computes x @ W + b directly.
    wqkv = 0.02 * jax.random.normal(k1, (dim, 3 * dim), jnp.float32)
    bqkv = 0.02 * jax.random.normal(k2, (3 * dim,), jnp.float32)
    wproj = 0.02 * jax.random.normal(k3, (dim, dim), jnp.float32)
    bproj = 0.02 * jax.random.normal(k4, (dim,), jnp.float32)
    perm = _qkv_column_permutation(dim, heads)
    return {
        "wqkv": wqkv[:, perm].astype(jnp.bfloat16),
        "bqkv": bqkv[perm].reshape(1, 3 * dim),
        "wproj": wproj.astype(jnp.bfloat16),
        "bproj": bproj.reshape(1, dim),
    }


# ----------------------------- main ------------------------------------------
if __name__ == "__main__":
    key = jax.random.PRNGKey(0)
    k_param, k_x = jax.random.split(key)

    params = init_params(k_param)
    x = jax.random.normal(k_x, (B, S, DIM), jnp.float32)
    lengths = jnp.array([S, S - 4], dtype=jnp.int32)
    mask = jnp.arange(S)[None, :] < lengths[:, None]     # [B, S] bool, True = keep

    fwd = jax.jit(alt_attention)
    out = fwd(x, mask, params)
    jax.block_until_ready(out)
    assert out.shape == (B, S, DIM)
    assert bool(jnp.all(jnp.isfinite(out)))
    print("KERNEL_OK")
</pallas_src>

<mosaic_0001>
module attributes {stable_mosaic.version = 11 : i64} {
  func.func @_alt_attention_kernel(%arg0: i32, %arg1: memref<2x16x64xf32, #tpu.memory_space<vmem>>, %arg2: memref<2x1x16xf32, #tpu.memory_space<vmem>>, %arg3: memref<64x192xbf16, #tpu.memory_space<vmem>>, %arg4: memref<1x192xf32, #tpu.memory_space<vmem>>, %arg5: memref<64x64xbf16, #tpu.memory_space<vmem>>, %arg6: memref<1x64xf32, #tpu.memory_space<vmem>>, %arg7: memref<2x16x64xf32, #tpu.memory_space<vmem>>) attributes {dimension_semantics = [#tpu.dimension_semantics<arbitrary>], iteration_bounds = array<i64: 1>, scalar_prefetch = 0 : i64, scratch_operands = 0 : i64, tpu.core_type = #tpu.core_type<tc>, window_params = [{pipeline_mode = #tpu.pipeline_mode<synchronous>, transform_indices = @transform_0, window_bounds = array<i64: 2, 16, 64>}, {pipeline_mode = #tpu.pipeline_mode<synchronous>, transform_indices = @transform_1, window_bounds = array<i64: 2, 1, 16>}, {pipeline_mode = #tpu.pipeline_mode<synchronous>, transform_indices = @transform_2, window_bounds = array<i64: 64, 192>}, {pipeline_mode = #tpu.pipeline_mode<synchronous>, transform_indices = @transform_3, window_bounds = array<i64: 1, 192>}, {pipeline_mode = #tpu.pipeline_mode<synchronous>, transform_indices = @transform_4, window_bounds = array<i64: 64, 64>}, {pipeline_mode = #tpu.pipeline_mode<synchronous>, transform_indices = @transform_5, window_bounds = array<i64: 1, 64>}, {pipeline_mode = #tpu.pipeline_mode<synchronous>, transform_indices = @transform_6, window_bounds = array<i64: 2, 16, 64>}]} {
    %c0 = arith.constant 0 : index
    %c0_0 = arith.constant 0 : index
    %c0_1 = arith.constant 0 : index
    %0 = vector.load %arg1[%c0, %c0_0, %c0_1] : memref<2x16x64xf32, #tpu.memory_space<vmem>>, vector<1x16x64xf32>
    %1 = vector.shape_cast %0 : vector<1x16x64xf32> to vector<16x64xf32>
    %c1 = arith.constant 1 : index
    %c0_2 = arith.constant 0 : index
    %c0_3 = arith.constant 0 : index
    %2 = vector.load %arg1[%c1, %c0_2, %c0_3] : memref<2x16x64xf32, #tpu.memory_space<vmem>>, vector<1x16x64xf32>
    %3 = vector.shape_cast %2 : vector<1x16x64xf32> to vector<16x64xf32>
    %4 = tpu.concatenate %1, %3 in 0 : vector<16x64xf32>, vector<16x64xf32> -> vector<32x64xf32>
    %5 = arith.truncf %4 : vector<32x64xf32> to vector<32x64xbf16>
    %c0_4 = arith.constant 0 : index
    %c0_5 = arith.constant 0 : index
    %6 = vector.load %arg3[%c0_4, %c0_5] : memref<64x192xbf16, #tpu.memory_space<vmem>>, vector<64x192xbf16>
    %cst = arith.constant dense<0.000000e+00> : vector<32x192xf32>
    %7 = tpu.matmul %5, %6, %cst {dimension_numbers = #tpu.dot_dimension_numbers<[1], [0], [0], [1], [0, 0, 1, 1], [], []>} : vector<32x64xbf16>, vector<64x192xbf16>, vector<32x192xf32> -> vector<32x192xf32>
    %c0_6 = arith.constant 0 : index
    %c0_7 = arith.constant 0 : index
    %8 = vector.load %arg4[%c0_6, %c0_7] : memref<1x192xf32, #tpu.memory_space<vmem>>, vector<1x192xf32>
    %9 = vector.broadcast %8 : vector<1x192xf32> to vector<32x192xf32>
    %10 = arith.addf %7, %9 : vector<32x192xf32>
    %11 = vector.extract_strided_slice %10 {offsets = [0, 0], sizes = [16, 192], strides = [1, 1]} : vector<32x192xf32> to vector<16x192xf32>
    %c0_8 = arith.constant 0 : index
    %c0_9 = arith.constant 0 : index
    %c0_10 = arith.constant 0 : index
    %12 = vector.load %arg2[%c0_8, %c0_9, %c0_10] : memref<2x1x16xf32, #tpu.memory_space<vmem>>, vector<1x1x16xf32>
    %13 = vector.shape_cast %12 : vector<1x1x16xf32> to vector<1x16xf32>
    %cst_11 = arith.constant 5.000000e-01 : f32
    %14 = vector.broadcast %cst_11 : f32 to vector<1x16xf32>
    %15 = arith.cmpf ogt, %13, %14 : vector<1x16xf32>
    %cst_12 = arith.constant 0.000000e+00 : f32
    %cst_13 = arith.constant -1.000000e+30 : f32
    %16 = vector.broadcast %cst_12 : f32 to vector<1x16xf32>
    %17 = vector.broadcast %cst_13 : f32 to vector<1x16xf32>
    %18 = arith.select %15, %16, %17 : vector<1x16xi1>, vector<1x16xf32>
    %19 = vector.extract_strided_slice %11 {offsets = [0, 0], sizes = [16, 16], strides = [1, 1]} : vector<16x192xf32> to vector<16x16xf32>
    %20 = arith.truncf %19 : vector<16x16xf32> to vector<16x16xbf16>
    %21 = vector.extract_strided_slice %11 {offsets = [0, 64], sizes = [16, 16], strides = [1, 1]} : vector<16x192xf32> to vector<16x16xf32>
    %22 = arith.truncf %21 : vector<16x16xf32> to vector<16x16xbf16>
    %23 = vector.extract_strided_slice %11 {offsets = [0, 128], sizes = [16, 16], strides = [1, 1]} : vector<16x192xf32> to vector<16x16xf32>
    %24 = arith.truncf %23 : vector<16x16xf32> to vector<16x16xbf16>
    %cst_14 = arith.constant dense<0.000000e+00> : vector<16x16xf32>
    %25 = tpu.matmul %20, %22, %cst_14 {dimension_numbers = #tpu.dot_dimension_numbers<[1], [1], [0], [0], [0, 0, 1, 0], [], []>} : vector<16x16xbf16>, vector<16x16xbf16>, vector<16x16xf32> -> vector<16x16xf32>
    %cst_15 = arith.constant 1.250000e-01 : f32
    %26 = vector.broadcast %cst_15 : f32 to vector<16x16xf32>
    %27 = arith.mulf %25, %26 : vector<16x16xf32>
    %28 = vector.broadcast %18 : vector<1x16xf32> to vector<16x16xf32>
    %29 = arith.addf %27, %28 : vector<16x16xf32>
    %cst_16 = arith.constant dense<0xFF800000> : vector<16xf32>
    %30 = vector.multi_reduction <maximumf>, %29, %cst_16 [1] : vector<16x16xf32> to vector<16xf32>
    %31 = vector.shape_cast %30 : vector<16xf32> to vector<16x1xf32>
    %32 = vector.broadcast %31 : vector<16x1xf32> to vector<16x16xf32>
    %33 = arith.subf %29, %32 : vector<16x16xf32>
    %34 = math.exp %33 : vector<16x16xf32>
    %cst_17 = arith.constant dense<0.000000e+00> : vector<16xf32>
    %35 = vector.multi_reduction <add>, %34, %cst_17 [1] : vector<16x16xf32> to vector<16xf32>
    %36 = vector.shape_cast %35 : vector<16xf32> to vector<16x1xf32>
    %cst_18 = arith.constant 1.000000e-30 : f32
    %37 = vector.broadcast %cst_18 : f32 to vector<16x1xf32>
    %38 = arith.maximumf %36, %37 : vector<16x1xf32>
    %39 = tpu.reciprocal %38 {approx = true} : vector<16x1xf32> -> vector<16x1xf32>
    %40 = vector.broadcast %39 : vector<16x1xf32> to vector<16x16xf32>
    %41 = arith.mulf %34, %40 : vector<16x16xf32>
    %42 = arith.truncf %41 : vector<16x16xf32> to vector<16x16xbf16>
    %cst_19 = arith.constant dense<0.000000e+00> : vector<16x16xf32>
    %43 = tpu.matmul %42, %24, %cst_19 {dimension_numbers = #tpu.dot_dimension_numbers<[1], [0], [0], [1], [0, 0, 1, 1], [], []>} : vector<16x16xbf16>, vector<16x16xbf16>, vector<16x16xf32> -> vector<16x16xf32>
    %44 = vector.extract_strided_slice %11 {offsets = [0, 16], sizes = [16, 16], strides = [1, 1]} : vector<16x192xf32> to vector<16x16xf32>
    %45 = arith.truncf %44 : vector<16x16xf32> to vector<16x16xbf16>
    %46 = vector.extract_strided_slice %11 {offsets = [0, 80], sizes = [16, 16], strides = [1, 1]} : vector<16x192xf32> to vector<16x16xf32>
    %47 = arith.truncf %46 : vector<16x16xf32> to vector<16x16xbf16>
    %48 = vector.extract_strided_slice %11 {offsets = [0, 144], sizes = [16, 16], strides = [1, 1]} : vector<16x192xf32> to vector<16x16xf32>
    %49 = arith.truncf %48 : vector<16x16xf32> to vector<16x16xbf16>
    %cst_20 = arith.constant dense<0.000000e+00> : vector<16x16xf32>
    %50 = tpu.matmul %45, %47, %cst_20 {dimension_numbers = #tpu.dot_dimension_numbers<[1], [1], [0], [0], [0, 0, 1, 0], [], []>} : vector<16x16xbf16>, vector<16x16xbf16>, vector<16x16xf32> -> vector<16x16xf32>
    %cst_21 = arith.constant 1.250000e-01 : f32
    %51 = vector.broadcast %cst_21 : f32 to vector<16x16xf32>
    %52 = arith.mulf %50, %51 : vector<16x16xf32>
    %53 = vector.broadcast %18 : vector<1x16xf32> to vector<16x16xf32>
    %54 = arith.addf %52, %53 : vector<16x16xf32>
    %cst_22 = arith.constant dense<0xFF800000> : vector<16xf32>
    %55 = vector.multi_reduction <maximumf>, %54, %cst_22 [1] : vector<16x16xf32> to vector<16xf32>
    %56 = vector.shape_cast %55 : vector<16xf32> to vector<16x1xf32>
    %57 = vector.broadcast %56 : vector<16x1xf32> to vector<16x16xf32>
    %58 = arith.subf %54, %57 : vector<16x16xf32>
    %59 = math.exp %58 : vector<16x16xf32>
    %cst_23 = arith.constant dense<0.000000e+00> : vector<16xf32>
    %60 = vector.multi_reduction <add>, %59, %cst_23 [1] : vector<16x16xf32> to vector<16xf32>
    %61 = vector.shape_cast %60 : vector<16xf32> to vector<16x1xf32>
    %cst_24 = arith.constant 1.000000e-30 : f32
    %62 = vector.broadcast %cst_24 : f32 to vector<16x1xf32>
    %63 = arith.maximumf %61, %62 : vector<16x1xf32>
    %64 = tpu.reciprocal %63 {approx = true} : vector<16x1xf32> -> vector<16x1xf32>
    %65 = vector.broadcast %64 : vector<16x1xf32> to vector<16x16xf32>
    %66 = arith.mulf %59, %65 : vector<16x16xf32>
    %67 = arith.truncf %66 : vector<16x16xf32> to vector<16x16xbf16>
    %cst_25 = arith.constant dense<0.000000e+00> : vector<16x16xf32>
    %68 = tpu.matmul %67, %49, %cst_25 {dimension_numbers = #tpu.dot_dimension_numbers<[1], [0], [0], [1], [0, 0, 1, 1], [], []>} : vector<16x16xbf16>, vector<16x16xbf16>, vector<16x16xf32> -> vector<16x16xf32>
    %69 = vector.extract_strided_slice %11 {offsets = [0, 32], sizes = [16, 16], strides = [1, 1]} : vector<16x192xf32> to vector<16x16xf32>
    %70 = arith.truncf %69 : vector<16x16xf32> to vector<16x16xbf16>
    %71 = vector.extract_strided_slice %11 {offsets = [0, 96], sizes = [16, 16], strides = [1, 1]} : vector<16x192xf32> to vector<16x16xf32>
    %72 = arith.truncf %71 : vector<16x16xf32> to vector<16x16xbf16>
    %73 = vector.extract_strided_slice %11 {offsets = [0, 160], sizes = [16, 16], strides = [1, 1]} : vector<16x192xf32> to vector<16x16xf32>
    %74 = arith.truncf %73 : vector<16x16xf32> to vector<16x16xbf16>
    %cst_26 = arith.constant dense<0.000000e+00> : vector<16x16xf32>
    %75 = tpu.matmul %70, %72, %cst_26 {dimension_numbers = #tpu.dot_dimension_numbers<[1], [1], [0], [0], [0, 0, 1, 0], [], []>} : vector<16x16xbf16>, vector<16x16xbf16>, vector<16x16xf32> -> vector<16x16xf32>
    %cst_27 = arith.constant 1.250000e-01 : f32
    %76 = vector.broadcast %cst_27 : f32 to vector<16x16xf32>
    %77 = arith.mulf %75, %76 : vector<16x16xf32>
    %78 = vector.broadcast %18 : vector<1x16xf32> to vector<16x16xf32>
    %79 = arith.addf %77, %78 : vector<16x16xf32>
    %cst_28 = arith.constant dense<0xFF800000> : vector<16xf32>
    %80 = vector.multi_reduction <maximumf>, %79, %cst_28 [1] : vector<16x16xf32> to vector<16xf32>
    %81 = vector.shape_cast %80 : vector<16xf32> to vector<16x1xf32>
    %82 = vector.broadcast %81 : vector<16x1xf32> to vector<16x16xf32>
    %83 = arith.subf %79, %82 : vector<16x16xf32>
    %84 = math.exp %83 : vector<16x16xf32>
    %cst_29 = arith.constant dense<0.000000e+00> : vector<16xf32>
    %85 = vector.multi_reduction <add>, %84, %cst_29 [1] : vector<16x16xf32> to vector<16xf32>
    %86 = vector.shape_cast %85 : vector<16xf32> to vector<16x1xf32>
    %cst_30 = arith.constant 1.000000e-30 : f32
    %87 = vector.broadcast %cst_30 : f32 to vector<16x1xf32>
    %88 = arith.maximumf %86, %87 : vector<16x1xf32>
    %89 = tpu.reciprocal %88 {approx = true} : vector<16x1xf32> -> vector<16x1xf32>
    %90 = vector.broadcast %89 : vector<16x1xf32> to vector<16x16xf32>
    %91 = arith.mulf %84, %90 : vector<16x16xf32>
    %92 = arith.truncf %91 : vector<16x16xf32> to vector<16x16xbf16>
    %cst_31 = arith.constant dense<0.000000e+00> : vector<16x16xf32>
    %93 = tpu.matmul %92, %74, %cst_31 {dimension_numbers = #tpu.dot_dimension_numbers<[1], [0], [0], [1], [0, 0, 1, 1], [], []>} : vector<16x16xbf16>, vector<16x16xbf16>, vector<16x16xf32> -> vector<16x16xf32>
    %94 = vector.extract_strided_slice %11 {offsets = [0, 48], sizes = [16, 16], strides = [1, 1]} : vector<16x192xf32> to vector<16x16xf32>
    %95 = arith.truncf %94 : vector<16x16xf32> to vector<16x16xbf16>
    %96 = vector.extract_strided_slice %11 {offsets = [0, 112], sizes = [16, 16], strides = [1, 1]} : vector<16x192xf32> to vector<16x16xf32>
    %97 = arith.truncf %96 : vector<16x16xf32> to vector<16x16xbf16>
    %98 = vector.extract_strided_slice %11 {offsets = [0, 176], sizes = [16, 16], strides = [1, 1]} : vector<16x192xf32> to vector<16x16xf32>
    %99 = arith.truncf %98 : vector<16x16xf32> to vector<16x16xbf16>
    %cst_32 = arith.constant dense<0.000000e+00> : vector<16x16xf32>
    %100 = tpu.matmul %95, %97, %cst_32 {dimension_numbers = #tpu.dot_dimension_numbers<[1], [1], [0], [0], [0, 0, 1, 0], [], []>} : vector<16x16xbf16>, vector<16x16xbf16>, vector<16x16xf32> -> vector<16x16xf32>
    %cst_33 = arith.constant 1.250000e-01 : f32
    %101 = vector.broadcast %cst_33 : f32 to vector<16x16xf32>
    %102 = arith.mulf %100, %101 : vector<16x16xf32>
    %103 = vector.broadcast %18 : vector<1x16xf32> to vector<16x16xf32>
    %104 = arith.addf %102, %103 : vector<16x16xf32>
    %cst_34 = arith.constant dense<0xFF800000> : vector<16xf32>
    %105 = vector.multi_reduction <maximumf>, %104, %cst_34 [1] : vector<16x16xf32> to vector<16xf32>
    %106 = vector.shape_cast %105 : vector<16xf32> to vector<16x1xf32>
    %107 = vector.broadcast %106 : vector<16x1xf32> to vector<16x16xf32>
    %108 = arith.subf %104, %107 : vector<16x16xf32>
    %109 = math.exp %108 : vector<16x16xf32>
    %cst_35 = arith.constant dense<0.000000e+00> : vector<16xf32>
    %110 = vector.multi_reduction <add>, %109, %cst_35 [1] : vector<16x16xf32> to vector<16xf32>
    %111 = vector.shape_cast %110 : vector<16xf32> to vector<16x1xf32>
    %cst_36 = arith.constant 1.000000e-30 : f32
    %112 = vector.broadcast %cst_36 : f32 to vector<16x1xf32>
    %113 = arith.maximumf %111, %112 : vector<16x1xf32>
    %114 = tpu.reciprocal %113 {approx = true} : vector<16x1xf32> -> vector<16x1xf32>
    %115 = vector.broadcast %114 : vector<16x1xf32> to vector<16x16xf32>
    %116 = arith.mulf %109, %115 : vector<16x16xf32>
    %117 = arith.truncf %116 : vector<16x16xf32> to vector<16x16xbf16>
    %cst_37 = arith.constant dense<0.000000e+00> : vector<16x16xf32>
    %118 = tpu.matmul %117, %99, %cst_37 {dimension_numbers = #tpu.dot_dimension_numbers<[1], [0], [0], [1], [0, 0, 1, 1], [], []>} : vector<16x16xbf16>, vector<16x16xbf16>, vector<16x16xf32> -> vector<16x16xf32>
    %119 = tpu.concatenate %43, %68, %93, %118 in 1 : vector<16x16xf32>, vector<16x16xf32>, vector<16x16xf32>, vector<16x16xf32> -> vector<16x64xf32>
    %120 = vector.extract_strided_slice %10 {offsets = [16, 0], sizes = [16, 192], strides = [1, 1]} : vector<32x192xf32> to vector<16x192xf32>
    %c1_38 = arith.constant 1 : index
    %c0_39 = arith.constant 0 : index
    %c0_40 = arith.constant 0 : index
    %121 = vector.load %arg2[%c1_38, %c0_39, %c0_40] : memref<2x1x16xf32, #tpu.memory_space<vmem>>, vector<1x1x16xf32>
    %122 = vector.shape_cast %121 : vector<1x1x16xf32> to vector<1x16xf32>
    %cst_41 = arith.constant 5.000000e-01 : f32
    %123 = vector.broadcast %cst_41 : f32 to vector<1x16xf32>
    %124 = arith.cmpf ogt, %122, %123 : vector<1x16xf32>
    %cst_42 = arith.constant 0.000000e+00 : f32
    %cst_43 = arith.constant -1.000000e+30 : f32
    %125 = vector.broadcast %cst_42 : f32 to vector<1x16xf32>
    %126 = vector.broadcast %cst_43 : f32 to vector<1x16xf32>
    %127 = arith.select %124, %125, %126 : vector<1x16xi1>, vector<1x16xf32>
    %128 = vector.extract_strided_slice %120 {offsets = [0, 0], sizes = [16, 16], strides = [1, 1]} : vector<16x192xf32> to vector<16x16xf32>
    %129 = arith.truncf %128 : vector<16x16xf32> to vector<16x16xbf16>
    %130 = vector.extract_strided_slice %120 {offsets = [0, 64], sizes = [16, 16], strides = [1, 1]} : vector<16x192xf32> to vector<16x16xf32>
    %131 = arith.truncf %130 : vector<16x16xf32> to vector<16x16xbf16>
    %132 = vector.extract_strided_slice %120 {offsets = [0, 128], sizes = [16, 16], strides = [1, 1]} : vector<16x192xf32> to vector<16x16xf32>
    %133 = arith.truncf %132 : vector<16x16xf32> to vector<16x16xbf16>
    %cst_44 = arith.constant dense<0.000000e+00> : vector<16x16xf32>
    %134 = tpu.matmul %129, %131, %cst_44 {dimension_numbers = #tpu.dot_dimension_numbers<[1], [1], [0], [0], [0, 0, 1, 0], [], []>} : vector<16x16xbf16>, vector<16x16xbf16>, vector<16x16xf32> -> vector<16x16xf32>
    %cst_45 = arith.constant 1.250000e-01 : f32
    %135 = vector.broadcast %cst_45 : f32 to vector<16x16xf32>
    %136 = arith.mulf %134, %135 : vector<16x16xf32>
    %137 = vector.broadcast %127 : vector<1x16xf32> to vector<16x16xf32>
    %138 = arith.addf %136, %137 : vector<16x16xf32>
    %cst_46 = arith.constant dense<0xFF800000> : vector<16xf32>
    %139 = vector.multi_reduction <maximumf>, %138, %cst_46 [1] : vector<16x16xf32> to vector<16xf32>
    %140 = vector.shape_cast %139 : vector<16xf32> to vector<16x1xf32>
    %141 = vector.broadcast %140 : vector<16x1xf32> to vector<16x16xf32>
    %142 = arith.subf %138, %141 : vector<16x16xf32>
    %143 = math.exp %142 : vector<16x16xf32>
    %cst_47 = arith.constant dense<0.000000e+00> : vector<16xf32>
    %144 = vector.multi_reduction <add>, %143, %cst_47 [1] : vector<16x16xf32> to vector<16xf32>
    %145 = vector.shape_cast %144 : vector<16xf32> to vector<16x1xf32>
    %cst_48 = arith.constant 1.000000e-30 : f32
    %146 = vector.broadcast %cst_48 : f32 to vector<16x1xf32>
    %147 = arith.maximumf %145, %146 : vector<16x1xf32>
    %148 = tpu.reciprocal %147 {approx = true} : vector<16x1xf32> -> vector<16x1xf32>
    %149 = vector.broadcast %148 : vector<16x1xf32> to vector<16x16xf32>
    %150 = arith.mulf %143, %149 : vector<16x16xf32>
    %151 = arith.truncf %150 : vector<16x16xf32> to vector<16x16xbf16>
    %cst_49 = arith.constant dense<0.000000e+00> : vector<16x16xf32>
    %152 = tpu.matmul %151, %133, %cst_49 {dimension_numbers = #tpu.dot_dimension_numbers<[1], [0], [0], [1], [0, 0, 1, 1], [], []>} : vector<16x16xbf16>, vector<16x16xbf16>, vector<16x16xf32> -> vector<16x16xf32>
    %153 = vector.extract_strided_slice %120 {offsets = [0, 16], sizes = [16, 16], strides = [1, 1]} : vector<16x192xf32> to vector<16x16xf32>
    %154 = arith.truncf %153 : vector<16x16xf32> to vector<16x16xbf16>
    %155 = vector.extract_strided_slice %120 {offsets = [0, 80], sizes = [16, 16], strides = [1, 1]} : vector<16x192xf32> to vector<16x16xf32>
    %156 = arith.truncf %155 : vector<16x16xf32> to vector<16x16xbf16>
    %157 = vector.extract_strided_slice %120 {offsets = [0, 144], sizes = [16, 16], strides = [1, 1]} : vector<16x192xf32> to vector<16x16xf32>
    %158 = arith.truncf %157 : vector<16x16xf32> to vector<16x16xbf16>
    %cst_50 = arith.constant dense<0.000000e+00> : vector<16x16xf32>
    %159 = tpu.matmul %154, %156, %cst_50 {dimension_numbers = #tpu.dot_dimension_numbers<[1], [1], [0], [0], [0, 0, 1, 0], [], []>} : vector<16x16xbf16>, vector<16x16xbf16>, vector<16x16xf32> -> vector<16x16xf32>
    %cst_51 = arith.constant 1.250000e-01 : f32
    %160 = vector.broadcast %cst_51 : f32 to vector<16x16xf32>
    %161 = arith.mulf %159, %160 : vector<16x16xf32>
    %162 = vector.broadcast %127 : vector<1x16xf32> to vector<16x16xf32>
    %163 = arith.addf %161, %162 : vector<16x16xf32>
    %cst_52 = arith.constant dense<0xFF800000> : vector<16xf32>
    %164 = vector.multi_reduction <maximumf>, %163, %cst_52 [1] : vector<16x16xf32> to vector<16xf32>
    %165 = vector.shape_cast %164 : vector<16xf32> to vector<16x1xf32>
    %166 = vector.broadcast %165 : vector<16x1xf32> to vector<16x16xf32>
    %167 = arith.subf %163, %166 : vector<16x16xf32>
    %168 = math.exp %167 : vector<16x16xf32>
    %cst_53 = arith.constant dense<0.000000e+00> : vector<16xf32>
    %169 = vector.multi_reduction <add>, %168, %cst_53 [1] : vector<16x16xf32> to vector<16xf32>
    %170 = vector.shape_cast %169 : vector<16xf32> to vector<16x1xf32>
    %cst_54 = arith.constant 1.000000e-30 : f32
    %171 = vector.broadcast %cst_54 : f32 to vector<16x1xf32>
    %172 = arith.maximumf %170, %171 : vector<16x1xf32>
    %173 = tpu.reciprocal %172 {approx = true} : vector<16x1xf32> -> vector<16x1xf32>
    %174 = vector.broadcast %173 : vector<16x1xf32> to vector<16x16xf32>
    %175 = arith.mulf %168, %174 : vector<16x16xf32>
    %176 = arith.truncf %175 : vector<16x16xf32> to vector<16x16xbf16>
    %cst_55 = arith.constant dense<0.000000e+00> : vector<16x16xf32>
    %177 = tpu.matmul %176, %158, %cst_55 {dimension_numbers = #tpu.dot_dimension_numbers<[1], [0], [0], [1], [0, 0, 1, 1], [], []>} : vector<16x16xbf16>, vector<16x16xbf16>, vector<16x16xf32> -> vector<16x16xf32>
    %178 = vector.extract_strided_slice %120 {offsets = [0, 32], sizes = [16, 16], strides = [1, 1]} : vector<16x192xf32> to vector<16x16xf32>
    %179 = arith.truncf %178 : vector<16x16xf32> to vector<16x16xbf16>
    %180 = vector.extract_strided_slice %120 {offsets = [0, 96], sizes = [16, 16], strides = [1, 1]} : vector<16x192xf32> to vector<16x16xf32>
    %181 = arith.truncf %180 : vector<16x16xf32> to vector<16x16xbf16>
    %182 = vector.extract_strided_slice %120 {offsets = [0, 160], sizes = [16, 16], strides = [1, 1]} : vector<16x192xf32> to vector<16x16xf32>
    %183 = arith.truncf %182 : vector<16x16xf32> to vector<16x16xbf16>
    %cst_56 = arith.constant dense<0.000000e+00> : vector<16x16xf32>
    %184 = tpu.matmul %179, %181, %cst_56 {dimension_numbers = #tpu.dot_dimension_numbers<[1], [1], [0], [0], [0, 0, 1, 0], [], []>} : vector<16x16xbf16>, vector<16x16xbf16>, vector<16x16xf32> -> vector<16x16xf32>
    %cst_57 = arith.constant 1.250000e-01 : f32
    %185 = vector.broadcast %cst_57 : f32 to vector<16x16xf32>
    %186 = arith.mulf %184, %185 : vector<16x16xf32>
    %187 = vector.broadcast %127 : vector<1x16xf32> to vector<16x16xf32>
    %188 = arith.addf %186, %187 : vector<16x16xf32>
    %cst_58 = arith.constant dense<0xFF800000> : vector<16xf32>
    %189 = vector.multi_reduction <maximumf>, %188, %cst_58 [1] : vector<16x16xf32> to vector<16xf32>
    %190 = vector.shape_cast %189 : vector<16xf32> to vector<16x1xf32>
    %191 = vector.broadcast %190 : vector<16x1xf32> to vector<16x16xf32>
    %192 = arith.subf %188, %191 : vector<16x16xf32>
    %193 = math.exp %192 : vector<16x16xf32>
    %cst_59 = arith.constant dense<0.000000e+00> : vector<16xf32>
    %194 = vector.multi_reduction <add>, %193, %cst_59 [1] : vector<16x16xf32> to vector<16xf32>
    %195 = vector.shape_cast %194 : vector<16xf32> to vector<16x1xf32>
    %cst_60 = arith.constant 1.000000e-30 : f32
    %196 = vector.broadcast %cst_60 : f32 to vector<16x1xf32>
    %197 = arith.maximumf %195, %196 : vector<16x1xf32>
    %198 = tpu.reciprocal %197 {approx = true} : vector<16x1xf32> -> vector<16x1xf32>
    %199 = vector.broadcast %198 : vector<16x1xf32> to vector<16x16xf32>
    %200 = arith.mulf %193, %199 : vector<16x16xf32>
    %201 = arith.truncf %200 : vector<16x16xf32> to vector<16x16xbf16>
    %cst_61 = arith.constant dense<0.000000e+00> : vector<16x16xf32>
    %202 = tpu.matmul %201, %183, %cst_61 {dimension_numbers = #tpu.dot_dimension_numbers<[1], [0], [0], [1], [0, 0, 1, 1], [], []>} : vector<16x16xbf16>, vector<16x16xbf16>, vector<16x16xf32> -> vector<16x16xf32>
    %203 = vector.extract_strided_slice %120 {offsets = [0, 48], sizes = [16, 16], strides = [1, 1]} : vector<16x192xf32> to vector<16x16xf32>
    %204 = arith.truncf %203 : vector<16x16xf32> to vector<16x16xbf16>
    %205 = vector.extract_strided_slice %120 {offsets = [0, 112], sizes = [16, 16], strides = [1, 1]} : vector<16x192xf32> to vector<16x16xf32>
    %206 = arith.truncf %205 : vector<16x16xf32> to vector<16x16xbf16>
    %207 = vector.extract_strided_slice %120 {offsets = [0, 176], sizes = [16, 16], strides = [1, 1]} : vector<16x192xf32> to vector<16x16xf32>
    %208 = arith.truncf %207 : vector<16x16xf32> to vector<16x16xbf16>
    %cst_62 = arith.constant dense<0.000000e+00> : vector<16x16xf32>
    %209 = tpu.matmul %204, %206, %cst_62 {dimension_numbers = #tpu.dot_dimension_numbers<[1], [1], [0], [0], [0, 0, 1, 0], [], []>} : vector<16x16xbf16>, vector<16x16xbf16>, vector<16x16xf32> -> vector<16x16xf32>
    %cst_63 = arith.constant 1.250000e-01 : f32
    %210 = vector.broadcast %cst_63 : f32 to vector<16x16xf32>
    %211 = arith.mulf %209, %210 : vector<16x16xf32>
    %212 = vector.broadcast %127 : vector<1x16xf32> to vector<16x16xf32>
    %213 = arith.addf %211, %212 : vector<16x16xf32>
    %cst_64 = arith.constant dense<0xFF800000> : vector<16xf32>
    %214 = vector.multi_reduction <maximumf>, %213, %cst_64 [1] : vector<16x16xf32> to vector<16xf32>
    %215 = vector.shape_cast %214 : vector<16xf32> to vector<16x1xf32>
    %216 = vector.broadcast %215 : vector<16x1xf32> to vector<16x16xf32>
    %217 = arith.subf %213, %216 : vector<16x16xf32>
    %218 = math.exp %217 : vector<16x16xf32>
    %cst_65 = arith.constant dense<0.000000e+00> : vector<16xf32>
    %219 = vector.multi_reduction <add>, %218, %cst_65 [1] : vector<16x16xf32> to vector<16xf32>
    %220 = vector.shape_cast %219 : vector<16xf32> to vector<16x1xf32>
    %cst_66 = arith.constant 1.000000e-30 : f32
    %221 = vector.broadcast %cst_66 : f32 to vector<16x1xf32>
    %222 = arith.maximumf %220, %221 : vector<16x1xf32>
    %223 = tpu.reciprocal %222 {approx = true} : vector<16x1xf32> -> vector<16x1xf32>
    %224 = vector.broadcast %223 : vector<16x1xf32> to vector<16x16xf32>
    %225 = arith.mulf %218, %224 : vector<16x16xf32>
    %226 = arith.truncf %225 : vector<16x16xf32> to vector<16x16xbf16>
    %cst_67 = arith.constant dense<0.000000e+00> : vector<16x16xf32>
    %227 = tpu.matmul %226, %208, %cst_67 {dimension_numbers = #tpu.dot_dimension_numbers<[1], [0], [0], [1], [0, 0, 1, 1], [], []>} : vector<16x16xbf16>, vector<16x16xbf16>, vector<16x16xf32> -> vector<16x16xf32>
    %228 = tpu.concatenate %152, %177, %202, %227 in 1 : vector<16x16xf32>, vector<16x16xf32>, vector<16x16xf32>, vector<16x16xf32> -> vector<16x64xf32>
    %229 = tpu.concatenate %119, %228 in 0 : vector<16x64xf32>, vector<16x64xf32> -> vector<32x64xf32>
    %230 = arith.truncf %229 : vector<32x64xf32> to vector<32x64xbf16>
    %c0_68 = arith.constant 0 : index
    %c0_69 = arith.constant 0 : index
    %231 = vector.load %arg5[%c0_68, %c0_69] : memref<64x64xbf16, #tpu.memory_space<vmem>>, vector<64x64xbf16>
    %cst_70 = arith.constant dense<0.000000e+00> : vector<32x64xf32>
    %232 = tpu.matmul %230, %231, %cst_70 {dimension_numbers = #tpu.dot_dimension_numbers<[1], [0], [0], [1], [0, 0, 1, 1], [], []>} : vector<32x64xbf16>, vector<64x64xbf16>, vector<32x64xf32> -> vector<32x64xf32>
    %c0_71 = arith.constant 0 : index
    %c0_72 = arith.constant 0 : index
    %233 = vector.load %arg6[%c0_71, %c0_72] : memref<1x64xf32, #tpu.memory_space<vmem>>, vector<1x64xf32>
    %234 = vector.broadcast %233 : vector<1x64xf32> to vector<32x64xf32>
    %235 = arith.addf %232, %234 : vector<32x64xf32>
    %236 = vector.extract_strided_slice %235 {offsets = [0, 0], sizes = [16, 64], strides = [1, 1]} : vector<32x64xf32> to vector<16x64xf32>
    %c0_73 = arith.constant 0 : index
    %c0_74 = arith.constant 0 : index
    %c0_75 = arith.constant 0 : index
    %237 = vector.load %arg7[%c0_73, %c0_74, %c0_75] : memref<2x16x64xf32, #tpu.memory_space<vmem>>, vector<1x16x64xf32>
    %238 = vector.shape_cast %237 : vector<1x16x64xf32> to vector<16x64xf32>
    %239 = vector.shape_cast %236 : vector<16x64xf32> to vector<1x16x64xf32>
    tpu.vector_store %arg7[%c0_73, %c0_74, %c0_75], %239 {strides = array<i32>} : memref<2x16x64xf32, #tpu.memory_space<vmem>>, vector<1x16x64xf32>,
    %240 = vector.extract_strided_slice %235 {offsets = [16, 0], sizes = [16, 64], strides = [1, 1]} : vector<32x64xf32> to vector<16x64xf32>
    %c1_76 = arith.constant 1 : index
    %c0_77 = arith.constant 0 : index
    %c0_78 = arith.constant 0 : index
    %241 = vector.load %arg7[%c1_76, %c0_77, %c0_78] : memref<2x16x64xf32, #tpu.memory_space<vmem>>, vector<1x16x64xf32>
    %242 = vector.shape_cast %241 : vector<1x16x64xf32> to vector<16x64xf32>
    %243 = vector.shape_cast %240 : vector<16x64xf32> to vector<1x16x64xf32>
    tpu.vector_store %arg7[%c1_76, %c0_77, %c0_78], %243 {strides = array<i32>} : memref<2x16x64xf32, #tpu.memory_space<vmem>>, vector<1x16x64xf32>,
    return
  }
  func.func @transform_0(%arg0: i32) -> (i32, i32, i32) {
    %c0_i32 = arith.constant 0 : i32
    %c0_i32_0 = arith.constant 0 : i32
    %c0_i32_1 = arith.constant 0 : i32
    %c0_i32_2 = arith.constant 0 : i32
    return %c0_i32, %c0_i32_0, %c0_i32_1 : i32, i32, i32
  }
  func.func @transform_1(%arg0: i32) -> (i32, i32, i32) {
    %c0_i32 = arith.constant 0 : i32
    %c0_i32_0 = arith.constant 0 : i32
    %c0_i32_1 = arith.constant 0 : i32
    %c0_i32_2 = arith.constant 0 : i32
    return %c0_i32, %c0_i32_0, %c0_i32_1 : i32, i32, i32
  }
  func.func @transform_2(%arg0: i32) -> (i32, i32) {
    %c0_i32 = arith.constant 0 : i32
    %c0_i32_0 = arith.constant 0 : i32
    %c0_i32_1 = arith.constant 0 : i32
    return %c0_i32, %c0_i32_0 : i32, i32
  }
  func.func @transform_3(%arg0: i32) -> (i32, i32) {
    %c0_i32 = arith.constant 0 : i32
    %c0_i32_0 = arith.constant 0 : i32
    %c0_i32_1 = arith.constant 0 : i32
    return %c0_i32, %c0_i32_0 : i32, i32
  }
  func.func @transform_4(%arg0: i32) -> (i32, i32) {
    %c0_i32 = arith.constant 0 : i32
    %c0_i32_0 = arith.constant 0 : i32
    %c0_i32_1 = arith.constant 0 : i32
    return %c0_i32, %c0_i32_0 : i32, i32
  }
  func.func @transform_5(%arg0: i32) -> (i32, i32) {
    %c0_i32 = arith.constant 0 : i32
    %c0_i32_0 = arith.constant 0 : i32
    %c0_i32_1 = arith.constant 0 : i32
    return %c0_i32, %c0_i32_0 : i32, i32
  }
  func.func @transform_6(%arg0: i32) -> (i32, i32, i32) {
    %c0_i32 = arith.constant 0 : i32
    %c0_i32_0 = arith.constant 0 : i32
    %c0_i32_1 = arith.constant 0 : i32
    %c0_i32_2 = arith.constant 0 : i32
    return %c0_i32, %c0_i32_0, %c0_i32_1 : i32, i32, i32
  }
}

</mosaic_0001>

<bundles_post_ra>
// kernel: alt_attention.1
= control target key start
LH: loop header
LB: loop body
LE: loop exit
PB: predicated region body
PF: predicated region fallthrough
CT: control target
= control target key end

     0   :  { %11 = vsyncpa [#allocation3], 0  ;;  %s2258_s0 = inlined_call_operand.hbm [shape: f32[2,16,64], index: 0, kind: input, shape index: {}]   ;;  %s2259_s1 = inlined_call_operand.vmem [shape: f32[2,1,16], index: 1, kind: input, shape index: {}]   ;;  %s2260_s2 = inlined_call_operand.hbm [shape: bf16[64,192], index: 2, kind: input, shape index: {}]   ;;  %s2261_s3 = inlined_call_operand.vmem [shape: f32[1,192], index: 3, kind: input, shape index: {}]   ;;  %s2262_s4 = inlined_call_operand.hbm [shape: bf16[64,64], index: 4, kind: input, shape index: {}]   ;;  %s2263_s5 = inlined_call_operand.vmem [shape: f32[1,64], index: 5, kind: input, shape index: {}]   ;;  %s2264_s6 = inlined_call_operand.hbm [shape: f32[2,16,64], index: 6, kind: output, shape index: {}]  }
   0x1   :  { %12 = vsyncpa [#allocation6], 0 }
   0x2   :  { %13 = vsyncpa [#allocation4], 0  ;;  %s1810_s21 = smov [#allocation5]   ;;  %s1811_s23 = smov [#allocation2]  }
   0x3   :  { %s33_s22 = sshll.u32 %s1810_s21, 4  ;;  %s19_s24 = sshll.u32 %s1811_s23, 4  ;;  %s34_s22 = int_to_ptr.vmem [resolvable:$true] %s33_s22  ;;  %s1863_s24 = int_to_ptr.vmem [resolvable:$true] %s19_s24 }
   0x4   :  { %s1716_s27 = scalar_lea.hbm %s2260_s2, 1024 }
   0x5   :  { %p1717_p0 = scmp.ne.s32.totalorder %s2260_s2, %s1716_s27  ;;  %p1720_p1 = scmp.lt.u32.totalorder %s1716_s27, %s2260_s2 }
   0x7   :  { %p1722_p2 = pnand %p1720_p1, %p1717_p0 }
   0x9   :  { %1725 = shalt.err (!%p1722_p2)
}
   0xa   :  { %s1726_s8 = scalar_lea.vmem %s34_s22, 1024  ;;  %p1731_p4 = scmp.lt.s32.totalorder %s34_s22, %s34_s22 }
   0xb   :  { %p1727_p3 = scmp.ne.s32.totalorder %s34_s22, %s1726_s8  ;;  %p1732_p5 = scmp.lt.s32.totalorder %s1726_s8, %s1726_s8 }
   0xd   :  { %p1733_p6 = por %p1732_p5, %p1731_p4 }
   0xf   :  { %p1734_p7 = pnand %p1733_p6, %p1727_p3 }
  0x11   :  { %1737 = shalt.err (!%p1734_p7)
}
  0x12   :  { %s1812_s9 = smov 128   ;;  %s1813_s10 = smov 8  }
  0x13   :  { %39 = dma.hbm_to_vmem [thread:$0]  %s2260_s2, 1024, %s34_s22, [#allocation6], %s1812_s9, %s1812_s9, %s1813_s10  }
  0x14   :  { %s1738_s15 = scalar_lea.hbm %s2258_s0, 512 }
  0x15   :  { %p1739_p8 = scmp.ne.s32.totalorder %s2258_s0, %s1738_s15  ;;  %p1742_p9 = scmp.lt.u32.totalorder %s1738_s15, %s2258_s0 }
  0x17   :  { %p1744_p10 = pnand %p1742_p9, %p1739_p8 }
  0x19   :  { %1747 = shalt.err (!%p1744_p10)
}
  0x1a   :  { %s1748_s20 = scalar_lea.vmem %s1863_s24, 512  ;;  %p1753_p12 = scmp.lt.s32.totalorder %s1863_s24, %s1863_s24 }
  0x1b   :  { %p1749_p11 = scmp.ne.s32.totalorder %s1863_s24, %s1748_s20  ;;  %p1754_p13 = scmp.lt.s32.totalorder %s1748_s20, %s1748_s20 }
  0x1d   :  { %p1755_p0 = por %p1754_p13, %p1753_p12 }
  0x1f   :  { %p1756_p1 = pnand %p1755_p0, %p1749_p11 }
  0x21   :  { %1759 = shalt.err (!%p1756_p1)
}
  0x22   :  { %25 = dma.hbm_to_vmem [thread:$0]  %s2258_s0, 512, %s1863_s24, [#allocation3], %s1812_s9, %s1812_s9, %s1813_s10  }
  0x23   :  { %s1814_s22 = smov [#allocation7]   ;;  %s1760_s27 = scalar_lea.hbm %s2262_s4, 512 }
  0x24   :  { %s47_s23 = sshll.u32 %s1814_s22, 4  ;;  %p1761_p2 = scmp.ne.s32.totalorder %s2262_s4, %s1760_s27  ;;  %s48_s23 = int_to_ptr.vmem [resolvable:$true] %s47_s23 }
  0x25   :  { %p1764_p3 = scmp.lt.u32.totalorder %s1760_s27, %s2262_s4 }
  0x27   :  { %p1766_p4 = pnand %p1764_p3, %p1761_p2 }
  0x29   :  { %1769 = shalt.err (!%p1766_p4)
}
  0x2a   :  { %s1770_s8 = scalar_lea.vmem %s48_s23, 512  ;;  %p1775_p6 = scmp.lt.s32.totalorder %s48_s23, %s48_s23 }
  0x2b   :  { %p1771_p5 = scmp.ne.s32.totalorder %s48_s23, %s1770_s8  ;;  %p1776_p7 = scmp.lt.s32.totalorder %s1770_s8, %s1770_s8 }
  0x2d   :  { %p1777_p8 = por %p1776_p7, %p1775_p6 }
  0x2f   :  { %p1778_p9 = pnand %p1777_p8, %p1771_p5 }
  0x31   :  { %1781 = shalt.err (!%p1778_p9)
}
  0x32   :  { %s1815_s0 = smov 64   ;;  %s1816_s24 = smov 4  }
  0x33   :  { %53 = dma.hbm_to_vmem [thread:$0]  %s2262_s4, 512, %s48_s23, [#allocation6], %s1815_s0, %s1815_s0, %s1816_s24  }
  0x34   :  { %1804 = dma.done.wait [#allocation3], 512  }
  0x35   :  { %1805 = vsyncadd [#allocation3], 4294966784 }
  0x36   :  { %1806 = dma.done.wait [#allocation6], 1536  }
  0x37   :  { %1807 = vsyncadd [#allocation6], 4294965760  ;;  %v1817_v0 = vmov 0   ;;  %v1636_v1 = vld [vmem:[#allocation5 + $0x4] ss:$8 sps:$4 sm:$0xff]   ;;  %vm133_vm0 = vcmask 523264   ;;  %v83_v12 = vlaneseq }
  0x38   :  { %172 = vmatprep.mubr.bf16.mxu0 %v1817_v0  ;;  %v1638_v2 = vld [vmem:[#allocation5] ss:$8 sps:$4 sm:$0xff]   ;;  %140 = vmatprep.subr.bf16.mxu0 %v1636_v1  ;;  %v1639_v3 = vld [vmem:[#allocation5 + $0x14] ss:$8 sps:$4 sm:$0xff]   ;;  %v1641_v4 = vld [vmem:[#allocation5 + $0x10] ss:$8 sps:$4 sm:$0xff]  }
  0x39   :  { %141 = vmatpush1.bf16.msra.mxu0 %v1638_v2  ;;  %v1642_v5 = vld [vmem:[#allocation5 + $0x24] ss:$8 sps:$4 sm:$0xff]   ;;  %v1644_v6 = vld [vmem:[#allocation5 + $0x20] ss:$8 sps:$4 sm:$0xff]   ;;  %v1645_v7 = vld [vmem:[#allocation5 + $0x34] ss:$8 sps:$4 sm:$0xff]  }
  0x3a   :  { %142 = vmatprep.subr.bf16.mxu0 %v1639_v3  ;;  %v1647_v8 = vld [vmem:[#allocation5 + $0x30] ss:$8 sps:$4 sm:$0xff]   ;;  %v66_v9 = vld [vmem:[#allocation2] sm:$0xff]  ;;  %v67_v10 = vld [vmem:[#allocation2 + $0x8] sm:$0xff]  ;;  %v84_v13 = vshrl.u32 %v83_v12, 7  ;;  %v1818_v14 = vmov 0.0  }
  0x3b   :  { %v71_v11 = vpack.c.bf16 %v67_v10, %v66_v9  ;;  %1480 = vmatprep.subr.bf16.mxu1 %v1818_v14  ;;  %v81_v16 = vld [vmem:[%s2261_s3] sm:$0x3]  ;;  %vm1819_vm1 = vmmov 0   ;;  %vm201_vm2 = vcmask 130048   ;;  %v69_v32 = vld [vmem:[#allocation2 + $0x10] sm:$0xff]  ;;  %v70_v33 = vld [vmem:[#allocation2 + $0x18] sm:$0xff] }
  0x3c   :  { %v1917_v15 = vsub.s32 0, %v84_v13  ;;  %v89_v17 = vsub.s32 1, %v84_v13  ;;  %1482 = vmatprep.mubr.msk.bf16.mxu1 %vm1819_vm1, %v1818_v14  ;;  %v72_v34 = vpack.c.bf16 %v70_v33, %v69_v32  ;;  %v193_v35 = vld [vmem:[%s2259_s1] sm:$0x1]  ;;  %v1820_v36 = vmov -1e+30  }
  0x3d   :  { %143 = vmatpush1.bf16.msra.mxu0 %v1641_v4  ;;  %vm194_vm3 = vcmp.gt.f32.partialorder %v193_v35, 0.5  ;;  %s1821_s15 = smov 48   ;;  %s1822_s16 = smov 96   ;;  %vm736_vm5 = vcmask 261120   ;;  %vm739_vm6 = vcmask 392192  }
  0x3e   :  { %144 = vmatprep.subr.bf16.mxu0 %v1642_v5  ;;  %v86_v18 = vrot.slane %v81_v16, %v1917_v15  ;;  %v90_v20 = vrot.slane %v81_v16, %v89_v17  ;;  %v195_v37 = vsel %vm194_vm3, 0.0, %v1820_v36  ;;  %s1823_s17 = smov 32   ;;  %s1824_s18 = smov 16  }
  0x3f   :  { %v1947_v38 = vrot.slane %v195_v37, %v1917_v15  ;;  %s1825_s19 = smov 112   ;;  %s1826_s20 = smov 80  }
  0x40   :  { %s1827_s23 = smov [#allocation8]  }
  0x41   :  { %145 = vmatpush1.bf16.msra.mxu0 %v1644_v6  ;;  %s1395_s25 = sshll.u32 %s1827_s23, 4  ;;  %s1396_s25 = int_to_ptr.vmem [resolvable:$true] %s1395_s25 }
  0x42   :  { %146 = vmatprep.subr.bf16.mxu0 %v1645_v7  ;;  %p1787_p11 = scmp.lt.s32.totalorder %s1396_s25, %s1396_s25 }
  0x45   :  { %147 = vmatpush1.bf16.msra.mxu0 %v1647_v8 }
  0x46   :  { %1498 = vmatprep.subr.bf16.mxu0 %v1818_v14 }
  0x48   :  { %1416 = vmatmul.mubr.msk.bf16.vlgmr.msra.gmra.mrb[0].mxu0 %vm133_vm0, %v71_v11 }
  0x49   :  { %182 = vmatprep.mubr.bf16.mxu0 %v1817_v0 }
  0x50   :  { %1417 = vmatmul.mubr.msk.bf16.gmra.mrb[4].mxu0 %vm133_vm0, %v72_v34 }
  0x51   :  { %1500 = vmatprep.mubr.msk.bf16.mxu0 %vm1819_vm1, %v1818_v14 }
 0x11b   :  { %v174_v19 = vpop.f32.mrb[0].mxu0 }
 0x11c   :  { %v176_v21 = vpop.f32.mrb[1].mxu0  ;;  %v175_v23 = vadd.f32 %v174_v19, %v86_v18 }
 0x11d   :  { %v178_v22 = vpop.f32.mrb[2].mxu0  ;;  %v177_v26 = vadd.f32 %v176_v21, %v90_v20 }
 0x11e   :  { %v179_v24 = vadd.f32 %v178_v22, %v86_v18  ;;  %v180_v25 = vpop.f32.mrb[3].mxu0 }
 0x11f   :  { %v181_v27 = vadd.f32 %v180_v25, %v90_v20 }
 0x120   :  { %v1925_v28 = vpack.c.bf16 %v179_v24, %v175_v23 }
 0x121   :  { %v1927_v29 = vpack.c.bf16 %v181_v27, %v177_v26 }
 0x122   :  { %199 = vrot.lane.b32.xlu0 %v1925_v28, %s1815_s0 }
 0x123   :  { %v184_v49 = vpop.f32.mrb[4].mxu0 }
 0x124   :  { %v185_v50 = vadd.f32 %v184_v49, %v86_v18  ;;  %v186_v51 = vpop.f32.mrb[5].mxu0 }
 0x125   :  { %v187_v52 = vadd.f32 %v186_v51, %v90_v20  ;;  %v188_v53 = vpop.f32.mrb[6].mxu0 }
 0x126   :  { %v189_v54 = vadd.f32 %v188_v53, %v86_v18  ;;  %v190_v55 = vpop.f32.mrb[7].mxu0 }
 0x127   :  { %v191_v56 = vadd.f32 %v190_v55, %v90_v20 }
 0x128   :  { %v1957_v57 = vpack.c.bf16 %v189_v54, %v185_v50 }
 0x129   :  { %v1959_v58 = vpack.c.bf16 %v191_v56, %v187_v52 }
 0x194   :  { %v200_v30 = vpop.permute.xlu0 %199 }
 0x195   :  { %v206_v31 = vsel %vm201_vm2, %v200_v30, 0 }
 0x196   :  { %1481 = vmatpush3.bf16.xpose.msra.mxu1 %v206_v31 }
 0x197   :  { %1486 = vmatprep.subr.bf16.mxu1 %v1818_v14 }
 0x19d   :  { %1483 = vmatmul.mubr.msk.bf16.vlgmr.msra.gmra.mrb[0].mxu1 %vm201_vm2, %v1925_v28 }
 0x19e   :  { %1487 = vmatpush3.bf16.msra.mxu1 %v1927_v29  ;;  %1488 = vmatprep.mubr.msk.bf16.mxu1 %vm1819_vm1, %v1818_v14 }
 0x19f   :  { %1492 = vmatprep.subr.bf16.mxu1 %v1818_v14 }
 0x270   :  { %v242_v39 = vpop.f32.mrb[0].mxu1 }
 0x271   :  { %v249_v40 = vmul.f32 0.125, %v242_v39  ;;  %v1484_v41 = vpop.f32.mrb[1].mxu1 }
 0x272   :  { %v245_v42 = vpop.f32.mrb[2].mxu1 }
 0x273   :  { %v250_v43 = vmul.f32 0.125, %v245_v42  ;;  %v1485_v44 = vpop.f32.mrb[3].mxu1  ;;  %v257_v45 = vadd.f32 %v1947_v38, %v249_v40 }
 0x275   :  { %v259_v46 = vsel %vm201_vm2, %v257_v45, -inf  ;;  %v258_v47 = vadd.f32 %v1947_v38, %v250_v43 }
 0x276   :  { %260 = vmax.xlane.f32.xlu0 %v259_v46 }
 0x277   :  { %v262_v48 = vsel %vm201_vm2, %v258_v47, -inf }
 0x278   :  { %263 = vmax.xlane.f32.xlu1 %v262_v48 }
 0x289   :  { %330 = vrot.lane.b32.xlu1 %v1925_v28, %s1821_s15 }
 0x28c   :  { %456 = vrot.lane.b32.xlu0 %v1925_v28, %s1822_s16 }
 0x290   :  { %1007 = vrot.lane.b32.xlu0 %v1957_v57, %s1823_s17 }
 0x294   :  { %1134 = vrot.lane.b32.xlu0 %v1957_v57, %s1824_s18 }
 0x303   :  { %v261_v59 = vpop.xlane.xlu0 %260 }
 0x304   :  { %v265_v60 = vsub.f32 %v257_v45, %v261_v59 }
 0x305   :  { %v264_v61 = vpop.xlane.xlu1 %263 }
 0x306   :  { %v267_v62 = vmul.f32 1.442695, %v265_v60  ;;  %v266_v63 = vsub.f32 %v258_v47, %v264_v61 }
 0x307   :  { %v457_v22 = vpop.permute.xlu0 %456 }
 0x308   :  { %1652 = vpow2.f32 %v267_v62  ;;  %v269_v0 = vmul.f32 1.442695, %v266_v63  ;;  %v1426_v63 = vld [vmem:[%s2259_s1 + $0x1] sm:$0x1] }
 0x309   :  { %v331_v5 = vpop.permute.xlu1 %330  ;;  %vm744_vm4 = vcmp.gt.f32.partialorder %v1426_v63, 0.5 }
 0x30a   :  { %1654 = vpow2.f32 %v269_v0  ;;  %v336_v18 = vsel %vm201_vm2, %v331_v5, 0 }
 0x30b   :  { %v1008_v30 = vpop.permute.xlu0 %1007 }
 0x30c   :  { %v1013_v32 = vsel %vm201_vm2, %v1008_v30, 0 }
 0x30f   :  { %v1135_v33 = vpop.permute.xlu0 %1134 }
 0x310   :  { %v1140_v35 = vsel %vm201_vm2, %v1135_v33, 0 }
 0x312   :  { %v1653_v1 = vpop.eup %1652 }
 0x313   :  { %v271_v2 = vsel %vm201_vm2, %v1653_v1, 0.0 }
 0x314   :  { %v1655_v3 = vpop.eup %1654  ;;  %272 = vadd.xlane.f32.xlu1 %v271_v2 }
 0x315   :  { %v274_v4 = vsel %vm201_vm2, %v1655_v3, 0.0 }
 0x318   :  { %275 = vadd.xlane.f32.xlu1 %v274_v4 }
 0x329   :  { %328 = vrot.lane.b32.xlu1 %v1925_v28, %s1825_s19 }
 0x32d   :  { %458 = vrot.lane.b32.xlu1 %v1925_v28, %s1823_s17 }
 0x331   :  { %585 = vrot.lane.b32.xlu1 %v1925_v28, %s1824_s18 }
 0x335   :  { %583 = vrot.lane.b32.xlu1 %v1925_v28, %s1826_s20 }
 0x339   :  { %749 = vrot.lane.b32.xlu1 %v1957_v57, %s1815_s0 }
 0x33d   :  { %879 = vrot.lane.b32.xlu1 %v1957_v57, %s1821_s15 }
 0x341   :  { %877 = vrot.lane.b32.xlu1 %v1957_v57, %s1825_s19 }
 0x345   :  { %1005 = vrot.lane.b32.xlu1 %v1957_v57, %s1822_s16 }
 0x349   :  { %1132 = vrot.lane.b32.xlu1 %v1957_v57, %s1826_s20 }
 0x3a1   :  { %v273_v6 = vpop.xlane.xlu1 %272 }
 0x3a2   :  { %v277_v7 = vmax.f32 %v273_v6, 1e-30 }
 0x3a4   :  { %1656 = vrcp.f32 %v277_v7 }
 0x3a5   :  { %v276_v8 = vpop.xlane.xlu1 %275 }
 0x3a6   :  { %v278_v9 = vmax.f32 %v276_v8, 1e-30  ;;  %v745_v8 = vsel %vm744_vm4, 0.0, %v1820_v36 }
 0x3a8   :  { %1658 = vrcp.f32 %v278_v9 }
 0x3a9   :  { %v329_v16 = vpop.permute.xlu1 %328 }
 0x3ad   :  { %v459_v19 = vpop.permute.xlu1 %458 }
 0x3ae   :  { %v1657_v10 = vpop.eup %1656  ;;  %v464_v20 = vsel %vm201_vm2, %v459_v19, 0 }
 0x3af   :  { %v281_v12 = vmul.f32 %v1657_v10, %v1653_v1 }
 0x3b1   :  { %v586_v21 = vpop.permute.xlu1 %585 }
 0x3b2   :  { %v1659_v11 = vpop.eup %1658  ;;  %v591_v24 = vsel %vm201_vm2, %v586_v21, 0 }
 0x3b3   :  { %v282_v13 = vmul.f32 %v1659_v11, %v1655_v3  ;;  %v804_v11 = vrot.slane %v745_v8, %v1917_v15 }
 0x3b5   :  { %v283_v17 = vpack.c.bf16 %v282_v13, %v281_v12  ;;  %v584_v23 = vpop.permute.xlu1 %583 }
 0x3b7   :  { %1489 = vmatmul.mubr.msk.bf16.vlgmr.msra.gmra.mrb[4].mxu1 %vm201_vm2, %v283_v17 }
 0x3b8   :  { %1493 = vmatpush3.bf16.xpose.msra.mxu1 %v336_v18  ;;  %1494 = vmatprep.mubr.msk.bf16.mxu1 %vm1819_vm1, %v1818_v14 }
 0x3b9   :  { %1504 = vmatprep.subr.bf16.mxu1 %v1818_v14  ;;  %v750_v25 = vpop.permute.xlu1 %749 }
 0x3ba   :  { %v755_v26 = vsel %vm201_vm2, %v750_v25, 0 }
 0x3bd   :  { %v880_v27 = vpop.permute.xlu1 %879 }
 0x3be   :  { %v885_v28 = vsel %vm201_vm2, %v880_v27, 0 }
 0x3bf   :  { %1495 = vmatmul.mubr.msk.bf16.vlgmr.msra.gmra.mrb[8].mxu1 %vm201_vm2, %v329_v16 }
 0x3c0   :  { %1505 = vmatpush3.bf16.xpose.msra.mxu1 %v464_v20  ;;  %1506 = vmatprep.mubr.msk.bf16.mxu1 %vm1819_vm1, %v1818_v14 }
 0x3c1   :  { %1516 = vmatprep.subr.bf16.mxu1 %v1818_v14  ;;  %v878_v31 = vpop.permute.xlu1 %877 }
 0x3c5   :  { %v1006_v34 = vpop.permute.xlu1 %1005 }
 0x3c7   :  { %1507 = vmatmul.mubr.msk.bf16.vlgmr.msra.gmra.mrb[12].mxu1 %vm201_vm2, %v457_v22 }
 0x3c8   :  { %1517 = vmatpush3.bf16.xpose.msra.mxu1 %v591_v24  ;;  %1518 = vmatprep.mubr.msk.bf16.mxu1 %vm1819_vm1, %v1818_v14 }
 0x3c9   :  { %1528 = vmatprep.subr.bf16.mxu1 %v1818_v14  ;;  %v1133_v37 = vpop.permute.xlu1 %1132 }
 0x3cf   :  { %1519 = vmatmul.mubr.msk.bf16.vlgmr.msra.gmra.mrb[16].mxu1 %vm201_vm2, %v584_v23 }
 0x3d0   :  { %1529 = vmatpush3.bf16.xpose.msra.mxu1 %v755_v26  ;;  %1530 = vmatprep.mubr.msk.bf16.mxu1 %vm1819_vm1, %v1818_v14 }
 0x3d1   :  { %1540 = vmatprep.subr.bf16.mxu1 %v1818_v14 }
 0x3d7   :  { %1531 = vmatmul.mubr.msk.bf16.vlgmr.msra.gmra.mrb[20].mxu1 %vm201_vm2, %v1957_v57 }
 0x3d8   :  { %1541 = vmatpush3.bf16.xpose.msra.mxu1 %v885_v28  ;;  %1542 = vmatprep.mubr.msk.bf16.mxu1 %vm1819_vm1, %v1818_v14 }
 0x3d9   :  { %1552 = vmatprep.subr.bf16.mxu1 %v1818_v14 }
 0x3df   :  { %1543 = vmatmul.mubr.msk.bf16.vlgmr.msra.gmra.mrb[24].mxu1 %vm201_vm2, %v878_v31 }
 0x3e0   :  { %1553 = vmatpush3.bf16.xpose.msra.mxu1 %v1013_v32  ;;  %1554 = vmatprep.mubr.msk.bf16.mxu1 %vm1819_vm1, %v1818_v14 }
 0x3e1   :  { %1564 = vmatprep.subr.bf16.mxu1 %v1818_v14 }
 0x3e7   :  { %1555 = vmatmul.mubr.msk.bf16.vlgmr.msra.gmra.mrb[28].mxu1 %vm201_vm2, %v1006_v34 }
 0x3e8   :  { %1565 = vmatpush3.bf16.xpose.msra.mxu1 %v1140_v35  ;;  %1566 = vmatprep.mubr.msk.bf16.mxu1 %vm1819_vm1, %v1818_v14 }
 0x3ef   :  { %1567 = vmatmul.mubr.msk.bf16.vlgmr.msra.gmra.mrb[32].mxu1 %vm201_vm2, %v1133_v37 }
 0x48a   :  { %v2021_v39 = vpop.f32.mrb[4].mxu1 }
 0x48b   :  { %v1490_v40 = vpop.f32.mrb[5].mxu1 }
 0x48c   :  { %v2023_v41 = vpop.f32.mrb[6].mxu1 }
 0x48d   :  { %v1491_v42 = vpop.f32.mrb[7].mxu1 }
 0x492   :  { %v372_v43 = vpop.f32.mrb[8].mxu1 }
 0x493   :  { %v379_v44 = vmul.f32 0.125, %v372_v43  ;;  %v1496_v45 = vpop.f32.mrb[9].mxu1 }
 0x494   :  { %v375_v46 = vpop.f32.mrb[10].mxu1 }
 0x495   :  { %v380_v47 = vmul.f32 0.125, %v375_v46  ;;  %v1497_v48 = vpop.f32.mrb[11].mxu1  ;;  %v2026_v49 = vadd.f32 %v379_v44, %v1947_v38 }
 0x497   :  { %v383_v50 = vsel %vm201_vm2, %v2026_v49, -inf  ;;  %v2031_v51 = vadd.f32 %v380_v47, %v1947_v38 }
 0x498   :  { %384 = vmax.xlane.f32.xlu0 %v383_v50 }
 0x499   :  { %v386_v52 = vsel %vm201_vm2, %v2031_v51, -inf }
 0x49a   :  { %387 = vmax.xlane.f32.xlu1 %v386_v52  ;;  %v500_v53 = vpop.f32.mrb[12].mxu1 }
 0x49b   :  { %v507_v54 = vmul.f32 0.125, %v500_v53  ;;  %v1508_v55 = vpop.f32.mrb[13].mxu1 }
 0x49c   :  { %v503_v56 = vpop.f32.mrb[14].mxu1 }
 0x49d   :  { %v508_v57 = vmul.f32 0.125, %v503_v56  ;;  %v1509_v59 = vpop.f32.mrb[15].mxu1  ;;  %v2036_v60 = vadd.f32 %v507_v54, %v1947_v38 }
 0x49f   :  { %v511_v61 = vsel %vm201_vm2, %v2036_v60, -inf  ;;  %v2041_v62 = vadd.f32 %v508_v57, %v1947_v38 }
 0x4a0   :  { %512 = vmax.xlane.f32.xlu0 %v511_v61 }
 0x4a1   :  { %v514_v3 = vsel %vm201_vm2, %v2041_v62, -inf }
 0x4a2   :  { %v627_v0 = vpop.f32.mrb[16].mxu1 }
 0x4a3   :  { %v634_v1 = vmul.f32 0.125, %v627_v0  ;;  %v1520_v2 = vpop.f32.mrb[17].mxu1 }
 0x4a4   :  { %515 = vmax.xlane.f32.xlu0 %v514_v3  ;;  %v630_v4 = vpop.f32.mrb[18].mxu1 }
 0x4a5   :  { %v635_v5 = vmul.f32 0.125, %v630_v4  ;;  %v1521_v6 = vpop.f32.mrb[19].mxu1  ;;  %v2049_v7 = vadd.f32 %v634_v1, %v1947_v38 }
 0x4a7   :  { %v638_v9 = vsel %vm201_vm2, %v2049_v7, -inf  ;;  %v2055_v10 = vadd.f32 %v635_v5, %v1947_v38 }
 0x4a8   :  { %639 = vmax.xlane.f32.xlu1 %v638_v9 }
 0x4a9   :  { %v641_v12 = vsel %vm201_vm2, %v2055_v10, -inf }
 0x4aa   :  { %642 = vmax.xlane.f32.xlu0 %v641_v12  ;;  %v791_v13 = vpop.f32.mrb[20].mxu1 }
 0x4ab   :  { %v798_v16 = vmul.f32 0.125, %v791_v13  ;;  %v1532_v17 = vpop.f32.mrb[21].mxu1 }
 0x4ac   :  { %v794_v18 = vpop.f32.mrb[22].mxu1 }
 0x4ad   :  { %v799_v19 = vmul.f32 0.125, %v794_v18  ;;  %v1533_v20 = vpop.f32.mrb[23].mxu1  ;;  %v2060_v36 = vadd.f32 %v804_v11, %v798_v16 }
 0x4af   :  { %v808_v21 = vsel %vm201_vm2, %v2060_v36, -inf  ;;  %v2064_v38 = vadd.f32 %v804_v11, %v799_v19 }
 0x4b0   :  { %809 = vmax.xlane.f32.xlu1 %v808_v21 }
 0x4b1   :  { %v811_v15 = vsel %vm201_vm2, %v2064_v38, -inf }
 0x4b2   :  { %812 = vmax.xlane.f32.xlu0 %v811_v15  ;;  %v921_v22 = vpop.f32.mrb[24].mxu1 }
 0x4b3   :  { %v928_v23 = vmul.f32 0.125, %v921_v22  ;;  %v1544_v24 = vpop.f32.mrb[25].mxu1 }
 0x4b4   :  { %v924_v25 = vpop.f32.mrb[26].mxu1 }
 0x4b5   :  { %v929_v26 = vmul.f32 0.125, %v924_v25  ;;  %v1545_v27 = vpop.f32.mrb[27].mxu1  ;;  %v2068_v28 = vadd.f32 %v928_v23, %v804_v11 }
 0x4b7   :  { %v2070_v30 = vadd.f32 %v929_v26, %v804_v11  ;;  %v932_v56 = vsel %vm201_vm2, %v2068_v28, -inf }
 0x4b9   :  { %v935_v31 = vsel %vm201_vm2, %v2070_v30, -inf }
 0x4ba   :  { %936 = vmax.xlane.f32.xlu0 %v935_v31  ;;  %v1049_v32 = vpop.f32.mrb[28].mxu1 }
 0x4bb   :  { %v1056_v33 = vmul.f32 0.125, %v1049_v32  ;;  %v1556_v34 = vpop.f32.mrb[29].mxu1 }
 0x4bc   :  { %v1052_v35 = vpop.f32.mrb[30].mxu1 }
 0x4bd   :  { %v1057_v37 = vmul.f32 0.125, %v1052_v35  ;;  %v1557_v40 = vpop.f32.mrb[31].mxu1  ;;  %v2074_v42 = vadd.f32 %v1056_v33, %v804_v11 }
 0x4bf   :  { %v2076_v43 = vadd.f32 %v1057_v37, %v804_v11  ;;  %v1060_v57 = vsel %vm201_vm2, %v2074_v42, -inf }
 0x4c1   :  { %409 = vrot.lane.b32.xlu1 %v1927_v29, %s1825_s19  ;;  %v1063_v44 = vsel %vm201_vm2, %v2076_v43, -inf }
 0x4c2   :  { %1064 = vmax.xlane.f32.xlu0 %v1063_v44  ;;  %v1176_v45 = vpop.f32.mrb[32].mxu1 }
 0x4c3   :  { %v1183_v46 = vmul.f32 0.125, %v1176_v45  ;;  %v1568_v47 = vpop.f32.mrb[33].mxu1 }
 0x4c4   :  { %v1179_v48 = vpop.f32.mrb[34].mxu1 }
 0x4c5   :  { %v1184_v50 = vmul.f32 0.125, %v1179_v48  ;;  %v1569_v52 = vpop.f32.mrb[35].mxu1  ;;  %v2082_v53 = vadd.f32 %v1183_v46, %v804_v11 }
 0x4c7   :  { %v2084_v54 = vadd.f32 %v1184_v50, %v804_v11  ;;  %v1187_v59 = vsel %vm201_vm2, %v2082_v53, -inf }
 0x4c9   :  { %v1190_v55 = vsel %vm201_vm2, %v2084_v54, -inf }
 0x4ca   :  { %1191 = vmax.xlane.f32.xlu0 %v1190_v55 }
 0x4e5   :  { %933 = vmax.xlane.f32.xlu1 %v932_v56 }
 0x4e9   :  { %1061 = vmax.xlane.f32.xlu1 %v1060_v57 }
 0x4ed   :  { %1188 = vmax.xlane.f32.xlu1 %v1187_v59 }
 0x525   :  { %v385_v61 = vpop.xlane.xlu0 %384 }
 0x526   :  { %v389_v63 = vsub.f32 %v2026_v49, %v385_v61 }
 0x527   :  { %v388_v0 = vpop.xlane.xlu1 %387 }
 0x528   :  { %v391_v1 = vmul.f32 1.442695, %v389_v63  ;;  %v390_v2 = vsub.f32 %v2031_v51, %v388_v0 }
 0x52a   :  { %1660 = vpow2.f32 %v391_v1  ;;  %v393_v3 = vmul.f32 1.442695, %v390_v2 }
 0x52c   :  { %1662 = vpow2.f32 %v393_v3 }
 0x52d   :  { %v513_v4 = vpop.xlane.xlu0 %512 }
 0x52e   :  { %v517_v5 = vsub.f32 %v2036_v60, %v513_v4 }
 0x530   :  { %v519_v6 = vmul.f32 1.442695, %v517_v5 }
 0x531   :  { %v516_v8 = vpop.xlane.xlu0 %515 }
 0x532   :  { %1664 = vpow2.f32 %v519_v6  ;;  %v518_v9 = vsub.f32 %v2041_v62, %v516_v8 }
 0x534   :  { %v2098_v11 = vpop.eup %1660  ;;  %v521_v12 = vmul.f32 1.442695, %v518_v9 }
 0x535   :  { %v395_v49 = vsel %vm201_vm2, %v2098_v11, 0.0  ;;  %v640_v60 = vpop.xlane.xlu1 %639 }
 0x536   :  { %v2102_v13 = vpop.eup %1662  ;;  %1666 = vpow2.f32 %v521_v12  ;;  %396 = vadd.xlane.f32.xlu1 %v395_v49  ;;  %v644_v21 = vsub.f32 %v2049_v7, %v640_v60 }
 0x537   :  { %v398_v51 = vsel %vm201_vm2, %v2102_v13, 0.0  ;;  %v643_v15 = vpop.xlane.xlu0 %642 }
 0x538   :  { %399 = vadd.xlane.f32.xlu0 %v398_v51  ;;  %v645_v22 = vsub.f32 %v2055_v10, %v643_v15  ;;  %v646_v23 = vmul.f32 1.442695, %v644_v21 }
 0x53a   :  { %v648_v26 = vmul.f32 1.442695, %v645_v22  ;;  %1668 = vpow2.f32 %v646_v23 }
 0x53c   :  { %v2106_v16 = vpop.eup %1664  ;;  %1670 = vpow2.f32 %v648_v26 }
 0x53d   :  { %v810_v17 = vpop.xlane.xlu1 %809  ;;  %v523_v62 = vsel %vm201_vm2, %v2106_v16, 0.0 }
 0x53e   :  { %524 = vadd.xlane.f32.xlu1 %v523_v62  ;;  %v814_v24 = vsub.f32 %v2060_v36, %v810_v17 }
 0x53f   :  { %v813_v25 = vpop.xlane.xlu0 %812 }
 0x540   :  { %v2110_v18 = vpop.eup %1666  ;;  %v816_v27 = vmul.f32 1.442695, %v814_v24  ;;  %v815_v31 = vsub.f32 %v2064_v38, %v813_v25 }
 0x541   :  { %v410_v19 = vpop.permute.xlu1 %409  ;;  %v526_v20 = vsel %vm201_vm2, %v2110_v18, 0.0 }
 0x542   :  { %1499 = vmatpush3.bf16.msra.mxu0 %v410_v19  ;;  %527 = vadd.xlane.f32.xlu0 %v526_v20  ;;  %1672 = vpow2.f32 %v816_v27  ;;  %v818_v32 = vmul.f32 1.442695, %v815_v31 }
 0x543   :  { %1510 = vmatprep.subr.bf16.mxu0 %v1818_v14 }
 0x544   :  { %1674 = vpow2.f32 %v818_v32 }
 0x547   :  { %v937_v33 = vpop.xlane.xlu0 %936 }
 0x548   :  { %v939_v7 = vsub.f32 %v2070_v30, %v937_v33 }
 0x54a   :  { %v942_v40 = vmul.f32 1.442695, %v939_v7 }
 0x54f   :  { %663 = vrot.lane.b32.xlu1 %v1927_v29, %s1826_s20  ;;  %v1065_v10 = vpop.xlane.xlu0 %1064 }
 0x550   :  { %v1067_v44 = vsub.f32 %v2076_v43, %v1065_v10 }
 0x552   :  { %v1070_v50 = vmul.f32 1.442695, %v1067_v44 }
 0x558   :  { %536 = vrot.lane.b32.xlu0 %v1927_v29, %s1822_s16  ;;  %v2123_v29 = vpop.eup %1668 }
 0x559   :  { %v2126_v34 = vpop.eup %1670  ;;  %v650_v36 = vsel %vm201_vm2, %v2123_v29, 0.0 }
 0x55a   :  { %v2130_v37 = vpop.eup %1672  ;;  %v653_v47 = vsel %vm201_vm2, %v2126_v34, 0.0 }
 0x55b   :  { %v820_v30 = vsel %vm201_vm2, %v2130_v37, 0.0  ;;  %v2138_v48 = vpop.eup %1674 }
 0x55c   :  { %v823_v43 = vsel %vm201_vm2, %v2138_v48, 0.0 }
 0x572   :  { %v934_v35 = vpop.xlane.xlu1 %933 }
 0x573   :  { %v938_v38 = vsub.f32 %v2068_v28, %v934_v35  ;;  %651 = vadd.xlane.f32.xlu1 %v650_v36  ;;  %v1192_v28 = vpop.xlane.xlu0 %1191 }
 0x574   :  { %v1194_v56 = vsub.f32 %v2084_v54, %v1192_v28 }
 0x575   :  { %v940_v45 = vmul.f32 1.442695, %v938_v38 }
 0x576   :  { %v1062_v46 = vpop.xlane.xlu1 %1061  ;;  %v1197_v61 = vmul.f32 1.442695, %v1194_v56 }
 0x577   :  { %1676 = vpow2.f32 %v940_v45  ;;  %821 = vadd.xlane.f32.xlu1 %v820_v30  ;;  %654 = vadd.xlane.f32.xlu0 %v653_v47  ;;  %v1066_v6 = vsub.f32 %v2074_v42, %v1062_v46 }
 0x578   :  { %1678 = vpow2.f32 %v942_v40 }
 0x579   :  { %1680 = vpow2.f32 %v1070_v50  ;;  %v1068_v8 = vmul.f32 1.442695, %v1066_v6 }
 0x57a   :  { %v1189_v52 = vpop.xlane.xlu1 %1188 }
 0x57b   :  { %v1193_v55 = vsub.f32 %v2082_v53, %v1189_v52  ;;  %824 = vadd.xlane.f32.xlu0 %v823_v43 }
 0x57d   :  { %v1195_v57 = vmul.f32 1.442695, %v1193_v55 }
 0x57f   :  { %1682 = vpow2.f32 %v1195_v57 }
 0x580   :  { %1684 = vpow2.f32 %v1197_v61 }
 0x581   :  { %v2144_v59 = vpop.eup %1676  ;;  %1686 = vpow2.f32 %v1068_v8 }
 0x582   :  { %v944_v63 = vsel %vm201_vm2, %v2144_v59, 0.0  ;;  %v2148_v0 = vpop.eup %1678 }
 0x583   :  { %945 = vadd.xlane.f32.xlu0 %v944_v63  ;;  %v947_v1 = vsel %vm201_vm2, %v2148_v0, 0.0  ;;  %v2152_v53 = vpop.eup %1680 }
 0x584   :  { %v1075_v54 = vsel %vm201_vm2, %v2152_v53, 0.0 }
 0x587   :  { %948 = vadd.xlane.f32.xlu0 %v947_v1 }
 0x588   :  { %958 = vrot.lane.b32.xlu1 %v1959_v58, %s1825_s19 }
 0x589   :  { %v2158_v2 = vpop.eup %1682 }
 0x58a   :  { %v1199_v3 = vsel %vm201_vm2, %v2158_v2, 0.0  ;;  %v2162_v4 = vpop.eup %1684 }
 0x58b   :  { %1076 = vadd.xlane.f32.xlu0 %v1075_v54  ;;  %v1202_v5 = vsel %vm201_vm2, %v2162_v4, 0.0  ;;  %v2167_v9 = vpop.eup %1686 }
 0x58c   :  { %v1072_v12 = vsel %vm201_vm2, %v2167_v9, 0.0 }
 0x58f   :  { %1200 = vadd.xlane.f32.xlu0 %v1199_v3 }
 0x593   :  { %1203 = vadd.xlane.f32.xlu0 %v1202_v5 }
 0x5a9   :  { %1085 = vrot.lane.b32.xlu0 %v1959_v58, %s1822_s16 }
 0x5ac   :  { %1073 = vadd.xlane.f32.xlu1 %v1072_v12 }
 0x5bd   :  { %1212 = vrot.lane.b32.xlu1 %v1959_v58, %s1826_s20 }
 0x5c3   :  { %v397_v49 = vpop.xlane.xlu1 %396 }
 0x5c4   :  { %v401_v51 = vmax.f32 %v397_v49, 1e-30 }
 0x5c5   :  { %v400_v60 = vpop.xlane.xlu0 %399 }
 0x5c6   :  { %1688 = vrcp.f32 %v401_v51  ;;  %v402_v17 = vmax.f32 %v400_v60, 1e-30 }
 0x5c8   :  { %1690 = vrcp.f32 %v402_v17 }
 0x5cb   :  { %v525_v42 = vpop.xlane.xlu1 %524 }
 0x5cc   :  { %v529_v62 = vmax.f32 %v525_v42, 1e-30 }
 0x5ce   :  { %1692 = vrcp.f32 %v529_v62 }
 0x5cf   :  { %v528_v19 = vpop.xlane.xlu0 %527 }
 0x5d0   :  { %v1689_v20 = vpop.eup %1688  ;;  %v530_v21 = vmax.f32 %v528_v19, 1e-30 }
 0x5d1   :  { %v405_v22 = vmul.f32 %v1689_v20, %v2098_v11  ;;  %v664_v11 = vpop.permute.xlu1 %663 }
 0x5d2   :  { %v1691_v15 = vpop.eup %1690  ;;  %1694 = vrcp.f32 %v530_v21 }
 0x5d3   :  { %v406_v23 = vmul.f32 %v1691_v15, %v2102_v13  ;;  %v537_v25 = vpop.permute.xlu0 %536 }
 0x5d5   :  { %v407_v24 = vpack.c.bf16 %v406_v23, %v405_v22 }
 0x5d7   :  { %1501 = vmatmul.mubr.msk.bf16.vlgmr.msra.gmra.mrb[8].mxu0 %vm201_vm2, %v407_v24 }
 0x5d8   :  { %1511 = vmatpush3.bf16.msra.mxu0 %v537_v25  ;;  %1512 = vmatprep.mubr.msk.bf16.mxu0 %vm1819_vm1, %v1818_v14  ;;  %v1693_v26 = vpop.eup %1692 }
 0x5d9   :  { %1522 = vmatprep.subr.bf16.mxu0 %v1818_v14  ;;  %v533_v31 = vmul.f32 %v1693_v26, %v2106_v16 }
 0x5dc   :  { %v1695_v27 = vpop.eup %1694 }
 0x5dd   :  { %v534_v32 = vmul.f32 %v1695_v27, %v2110_v18 }
 0x5df   :  { %v535_v33 = vpack.c.bf16 %v534_v32, %v533_v31 }
 0x5e1   :  { %1513 = vmatmul.mubr.msk.bf16.vlgmr.msra.gmra.mrb[12].mxu0 %vm201_vm2, %v535_v33 }
 0x5e2   :  { %1523 = vmatpush3.bf16.msra.mxu0 %v664_v11  ;;  %1524 = vmatprep.mubr.msk.bf16.mxu0 %vm1819_vm1, %v1818_v14 }
 0x5e3   :  { %1534 = vmatprep.subr.bf16.mxu0 %v1818_v14 }
 0x600   :  { %v652_v13 = vpop.xlane.xlu1 %651 }
 0x601   :  { %v656_v7 = vmax.f32 %v652_v13, 1e-30 }
 0x603   :  { %1696 = vrcp.f32 %v656_v7 }
 0x604   :  { %v655_v10 = vpop.xlane.xlu0 %654  ;;  %v822_v36 = vpop.xlane.xlu1 %821 }
 0x605   :  { %v657_v35 = vmax.f32 %v655_v10, 1e-30  ;;  %v826_v18 = vmax.f32 %v822_v36, 1e-30  ;;  %v1648_v36 = vld [vmem:[#allocation7] sm:$0xff]  }
 0x606   :  { %1576 = vmatprep.subr.bf16.mxu1 %v1648_v36 }
 0x607   :  { %1698 = vrcp.f32 %v657_v35  ;;  %1577 = vmatpush3.bf16.msra.mxu1 %v1648_v36 }
 0x608   :  { %v825_v16 = vpop.xlane.xlu0 %824  ;;  %v959_v1 = vpop.permute.xlu1 %958 }
 0x609   :  { %v827_v38 = vmax.f32 %v825_v16, 1e-30 }
 0x60b   :  { %1700 = vrcp.f32 %v827_v38 }
 0x60c   :  { %1702 = vrcp.f32 %v826_v18 }
 0x60d   :  { %v1697_v40 = vpop.eup %1696 }
 0x60e   :  { %v660_v30 = vmul.f32 %v1697_v40, %v2123_v29 }
 0x610   :  { %v946_v44 = vpop.xlane.xlu0 %945 }
 0x611   :  { %v950_v45 = vmax.f32 %v946_v44, 1e-30  ;;  %v1699_v46 = vpop.eup %1698 }
 0x612   :  { %v661_v47 = vmul.f32 %v1699_v46, %v2126_v34  ;;  %v1649_v46 = vld [vmem:[#allocation7 + $0x8] sm:$0xff]  }
 0x613   :  { %1704 = vrcp.f32 %v950_v45  ;;  %1578 = vmatprep.subr.bf16.mxu1 %v1649_v46 }
 0x614   :  { %v949_v50 = vpop.xlane.xlu0 %948  ;;  %v662_v52 = vpack.c.bf16 %v661_v47, %v660_v30  ;;  %v1650_v30 = vld [vmem:[#allocation7 + $0x10] sm:$0xff]   ;;  %1579 = vmatpush3.bf16.msra.mxu1 %v1649_v46 }
 0x615   :  { %v951_v28 = vmax.f32 %v949_v50, 1e-30  ;;  %v1701_v43 = vpop.eup %1700  ;;  %1580 = vmatprep.subr.bf16.mxu1 %v1650_v30 }
 0x616   :  { %1525 = vmatmul.mubr.msk.bf16.vlgmr.msra.gmra.mrb[16].mxu0 %vm201_vm2, %v662_v52  ;;  %v1703_v55 = vpop.eup %1702  ;;  %v831_v57 = vmul.f32 %v1701_v43, %v2138_v48 }
 0x617   :  { %1706 = vrcp.f32 %v951_v28  ;;  %1535 = vmatpush3.bf16.msra.mxu0 %v1959_v58  ;;  %1536 = vmatprep.mubr.msk.bf16.mxu0 %vm1819_vm1, %v1818_v14  ;;  %v830_v29 = vmul.f32 %v1703_v55, %v2130_v37  ;;  %v1651_v28 = vld [vmem:[#allocation7 + $0x18] sm:$0xff]  }
 0x618   :  { %v1077_v56 = vpop.xlane.xlu0 %1076  ;;  %1546 = vmatprep.subr.bf16.mxu0 %v1818_v14  ;;  %1581 = vmatpush3.bf16.msra.mxu1 %v1650_v30 }
 0x619   :  { %v832_v61 = vpack.c.bf16 %v831_v57, %v830_v29  ;;  %v1079_v6 = vmax.f32 %v1077_v56, 1e-30  ;;  %1582 = vmatprep.subr.bf16.mxu1 %v1651_v28 }
 0x61b   :  { %1708 = vrcp.f32 %v1079_v6 }
 0x61c   :  { %v1201_v34 = vpop.xlane.xlu0 %1200  ;;  %1583 = vmatpush3.bf16.msra.mxu1 %v1651_v28 }
 0x61d   :  { %v1705_v63 = vpop.eup %1704  ;;  %v1205_v51 = vmax.f32 %v1201_v34, 1e-30 }
 0x61e   :  { %1537 = vmatmul.mubr.msk.bf16.vlgmr.msra.gmra.mrb[20].mxu0 %vm201_vm2, %v832_v61  ;;  %v954_v48 = vmul.f32 %v1705_v63, %v2144_v59 }
 0x61f   :  { %1547 = vmatpush3.bf16.msra.mxu0 %v959_v1  ;;  %1548 = vmatprep.mubr.msk.bf16.mxu0 %vm1819_vm1, %v1818_v14 }
 0x620   :  { %v1204_v54 = vpop.xlane.xlu0 %1203  ;;  %1558 = vmatprep.subr.bf16.mxu0 %v1818_v14 }
 0x621   :  { %v1707_v58 = vpop.eup %1706  ;;  %v1206_v49 = vmax.f32 %v1204_v54, 1e-30 }
 0x622   :  { %v955_v3 = vmul.f32 %v1707_v58, %v2148_v0 }
 0x624   :  { %v956_v5 = vpack.c.bf16 %v955_v3, %v954_v48  ;;  %v1086_v37 = vpop.permute.xlu0 %1085 }
 0x625   :  { %v1709_v59 = vpop.eup %1708 }
 0x626   :  { %1549 = vmatmul.mubr.msk.bf16.vlgmr.msra.gmra.mrb[24].mxu0 %vm201_vm2, %v956_v5  ;;  %v1083_v60 = vmul.f32 %v1709_v59, %v2152_v53 }
 0x627   :  { %1559 = vmatpush3.bf16.msra.mxu0 %v1086_v37  ;;  %1560 = vmatprep.mubr.msk.bf16.mxu0 %vm1819_vm1, %v1818_v14 }
 0x628   :  { %1570 = vmatprep.subr.bf16.mxu0 %v1818_v14 }
 0x639   :  { %v1074_v8 = vpop.xlane.xlu1 %1073 }
 0x63a   :  { %v1078_v12 = vmax.f32 %v1074_v8, 1e-30 }
 0x63c   :  { %1710 = vrcp.f32 %v1078_v12 }
 0x63d   :  { %1712 = vrcp.f32 %v1206_v49  ;;  %v1213_v19 = vpop.permute.xlu1 %1212 }
 0x63e   :  { %1714 = vrcp.f32 %v1205_v51 }
 0x646   :  { %v1711_v0 = vpop.eup %1710 }
 0x647   :  { %v1082_v17 = vmul.f32 %v1711_v0, %v2167_v9  ;;  %v1713_v62 = vpop.eup %1712 }
 0x648   :  { %v1715_v20 = vpop.eup %1714  ;;  %v1210_v21 = vmul.f32 %v1713_v62, %v2162_v4 }
 0x649   :  { %v1084_v42 = vpack.c.bf16 %v1083_v60, %v1082_v17  ;;  %v1209_v15 = vmul.f32 %v1715_v20, %v2158_v2 }
 0x64b   :  { %1561 = vmatmul.mubr.msk.bf16.vlgmr.msra.gmra.mrb[28].mxu0 %vm201_vm2, %v1084_v42  ;;  %v1211_v22 = vpack.c.bf16 %v1210_v21, %v1209_v15 }
 0x64c   :  { %1571 = vmatpush3.bf16.msra.mxu0 %v1213_v19  ;;  %1572 = vmatprep.mubr.msk.bf16.mxu0 %vm1819_vm1, %v1818_v14 }
 0x653   :  { %1573 = vmatmul.mubr.msk.bf16.vlgmr.msra.gmra.mrb[32].mxu0 %vm201_vm2, %v1211_v22 }
 0x6aa   :  { %v449_v53 = vpop.f32.mrb[8].mxu0 }
 0x6ab   :  { %v1502_v23 = vpop.f32.mrb[9].mxu0 }
 0x6ac   :  { %v452_v9 = vpop.f32.mrb[10].mxu0 }
 0x6ad   :  { %v1606_v24 = vpack.i.bf16 %v452_v9, %v449_v53  ;;  %v1503_v25 = vpop.f32.mrb[11].mxu0 }
 0x6af   :  { %1607 = vrot.lane.b32.xlu1 %v1606_v24, %s1824_s18 }
 0x6b4   :  { %v576_v26 = vpop.f32.mrb[12].mxu0 }
 0x6b5   :  { %v1514_v27 = vpop.f32.mrb[13].mxu0 }
 0x6b6   :  { %v579_v31 = vpop.f32.mrb[14].mxu0  ;;  %v1435_v27 = vld [vmem:[%s2263_s5] ss:$0 sm:$0xff]  ;;  %s1782_s5 = scalar_lea.vmem %s1396_s25, 512 }
 0x6b7   :  { %v1611_v32 = vpack.i.bf16 %v579_v31, %v576_v26  ;;  %v1515_v33 = vpop.f32.mrb[15].mxu0  ;;  %p1783_p10 = scmp.ne.s32.totalorder %s1396_s25, %s1782_s5  ;;  %p1788_p12 = scmp.lt.s32.totalorder %s1782_s5, %s1782_s5 }
 0x6b9   :  { %1612 = vrot.lane.b32.xlu1 %v1611_v32, %s1823_s17  ;;  %p1789_p13 = por %p1788_p12, %p1787_p11 }
 0x6bb   :  { %p1790_p0 = pnand %p1789_p13, %p1783_p10 }
 0x6e9   :  { %v703_v14 = vpop.f32.mrb[16].mxu0 }
 0x6ea   :  { %v1526_v4 = vpop.f32.mrb[17].mxu0 }
 0x6eb   :  { %v706_v2 = vpop.f32.mrb[18].mxu0 }
 0x6ec   :  { %v1616_v11 = vpack.i.bf16 %v706_v2, %v703_v14  ;;  %v1527_v13 = vpop.f32.mrb[19].mxu0 }
 0x6ee   :  { %1617 = vrot.lane.b32.xlu1 %v1616_v11, %s1821_s15 }
 0x6f1   :  { %v870_v7 = vpop.f32.mrb[20].mxu0 }
 0x6f2   :  { %v1538_v10 = vpop.f32.mrb[21].mxu0 }
 0x6f3   :  { %v873_v35 = vpop.f32.mrb[22].mxu0 }
 0x6f4   :  { %v1539_v16 = vpop.f32.mrb[23].mxu0 }
 0x6f9   :  { %v998_v38 = vpop.f32.mrb[24].mxu0 }
 0x6fa   :  { %v1550_v18 = vpop.f32.mrb[25].mxu0 }
 0x6fb   :  { %v1001_v40 = vpop.f32.mrb[26].mxu0 }
 0x6fc   :  { %v1621_v44 = vpack.i.bf16 %v1001_v40, %v998_v38  ;;  %v1551_v45 = vpop.f32.mrb[27].mxu0 }
 0x6fe   :  { %1622 = vrot.lane.b32.xlu1 %v1621_v44, %s1824_s18 }
 0x71e   :  { %v1125_v47 = vpop.f32.mrb[28].mxu0 }
 0x71f   :  { %v1562_v50 = vpop.f32.mrb[29].mxu0 }
 0x720   :  { %v1128_v52 = vpop.f32.mrb[30].mxu0 }
 0x721   :  { %v1626_v43 = vpack.i.bf16 %v1128_v52, %v1125_v47  ;;  %v1563_v55 = vpop.f32.mrb[31].mxu0  ;;  %v1608_v63 = vpop.permute.xlu1 %1607 }
 0x722   :  { %v1610_v54 = vunpack.i.h.bf16 %v1608_v63  ;;  %v1609_v58 = vunpack.i.l.bf16 %v1608_v63 }
 0x723   :  { %1627 = vrot.lane.b32.xlu0 %v1626_v43, %s1823_s17 }
 0x724   :  { %v735_v37 = vsel %vm201_vm2, %v2023_v41, %v1610_v54  ;;  %v734_v6 = vsel %vm201_vm2, %v2021_v39, %v1609_v58 }
 0x726   :  { %v1252_v56 = vpop.f32.mrb[32].mxu0 }
 0x727   :  { %v1574_v57 = vpop.f32.mrb[33].mxu0 }
 0x728   :  { %v1255_v29 = vpop.f32.mrb[34].mxu0 }
 0x729   :  { %v1631_v34 = vpack.i.bf16 %v1255_v29, %v1252_v56  ;;  %v1575_v61 = vpop.f32.mrb[35].mxu0 }
 0x72b   :  { %1632 = vrot.lane.b32.xlu1 %v1631_v34, %s1821_s15  ;;  %v1613_v1 = vpop.permute.xlu1 %1612 }
 0x72c   :  { %v1615_v48 = vunpack.i.h.bf16 %v1613_v1  ;;  %v1614_v3 = vunpack.i.l.bf16 %v1613_v1 }
 0x72e   :  { %v738_v49 = vsel %vm736_vm5, %v735_v37, %v1615_v48  ;;  %v737_v51 = vsel %vm736_vm5, %v734_v6, %v1614_v3 }
 0x760   :  { %v1618_v5 = vpop.permute.xlu1 %1617 }
 0x761   :  { %v1620_v8 = vunpack.i.h.bf16 %v1618_v5  ;;  %v1619_v12 = vunpack.i.l.bf16 %v1618_v5 }
 0x763   :  { %v741_v59 = vsel %vm739_vm6, %v738_v49, %v1620_v8  ;;  %v740_v0 = vsel %vm739_vm6, %v737_v51, %v1619_v12 }
 0x764   :  { %v1289_v60 = vpack.c.bf16 %v741_v59, %v740_v0 }
 0x766   :  { %1584 = vmatprep.mubr.msk.bf16.mxu1 %vm133_vm0, %v1289_v60 }
 0x770   :  { %v1623_v17 = vpop.permute.xlu1 %1622 }
 0x771   :  { %v1625_v62 = vunpack.i.h.bf16 %v1623_v17  ;;  %v1624_v41 = vunpack.i.l.bf16 %v1623_v17 }
 0x773   :  { %v1284_v21 = vsel %vm201_vm2, %v873_v35, %v1625_v62  ;;  %v1283_v15 = vsel %vm201_vm2, %v870_v7, %v1624_v41 }
 0x795   :  { %v1628_v42 = vpop.permute.xlu0 %1627 }
 0x796   :  { %v1630_v19 = vunpack.i.h.bf16 %v1628_v42  ;;  %v1629_v20 = vunpack.i.l.bf16 %v1628_v42 }
 0x798   :  { %v1286_v23 = vsel %vm736_vm5, %v1284_v21, %v1630_v19  ;;  %v1285_v9 = vsel %vm736_vm5, %v1283_v15, %v1629_v20 }
 0x79d   :  { %v1633_v39 = vpop.permute.xlu1 %1632 }
 0x79e   :  { %v1635_v22 = vunpack.i.h.bf16 %v1633_v39  ;;  %v1634_v53 = vunpack.i.l.bf16 %v1633_v39 }
 0x7a0   :  { %v1288_v24 = vsel %vm739_vm6, %v1286_v23, %v1635_v22  ;;  %v1287_v25 = vsel %vm739_vm6, %v1285_v9, %v1634_v53 }
 0x7a1   :  { %v1290_v26 = vpack.c.bf16 %v1288_v24, %v1287_v25 }
 0x7a3   :  { %1585 = vmatmul.mubr.msk.bf16.vlgmr.msra.gmra.mrb[36].mxu1 %vm133_vm0, %v1290_v26 }
 0x876   :  { %v1586_v31 = vpop.f32.mrb[36].mxu1 }
 0x877   :  { %v1379_v32 = vadd.f32 %v1586_v31, %v1435_v27  ;;  %v1370_v33 = vpop.f32.mrb[37].mxu1 }
 0x878   :  { %v1371_v14 = vadd.f32 %v1435_v27, %v1370_v33  ;;  %v1587_v4 = vpop.f32.mrb[38].mxu1 }
 0x879   :  { %1388 = vst.msk [vmem:[#allocation8 + $0x10] sm:$0xff] %vm133_vm0, %v1379_v32  ;;  %v1382_v2 = vadd.f32 %v1587_v4, %v1435_v27  ;;  %v1373_v11 = vpop.f32.mrb[39].mxu1 }
 0x87a   :  { %1385 = vst.msk [vmem:[#allocation8] sm:$0xff] %vm133_vm0, %v1371_v14  ;;  %v1374_v13 = vadd.f32 %v1435_v27, %v1373_v11 }
 0x87b   :  { %1389 = vst.msk [vmem:[#allocation8 + $0x18] sm:$0xff] %vm133_vm0, %v1382_v2 }
 0x87c   :  { %1386 = vst.msk [vmem:[#allocation8 + $0x8] sm:$0xff] %vm133_vm0, %v1374_v13 }
 0x87d   :  { %1793 = shalt.err (!%p1790_p0)
}
 0x87e   :  { %s1794_s28 = scalar_lea.hbm %s2264_s6, 512 }
 0x87f   :  { %p1795_p1 = scmp.ne.s32.totalorder %s2264_s6, %s1794_s28  ;;  %p1798_p2 = scmp.lt.u32.totalorder %s1794_s28, %s2264_s6 }
 0x881   :  { %p1800_p3 = pnand %p1798_p2, %p1795_p1 }
 0x883   :  { %1803 = shalt.err (!%p1800_p3)
}
 0x884   :  { %1401 = dma.vmem_to_hbm [thread:$0]  %s1396_s25, 512, %s2264_s6, [#allocation4], %s1812_s9, %s1812_s9, %s1813_s10  }
 0x885   :  { %1808 = dma.done.wait [#allocation4], 512  }
 0x886   :  { %1809 = vsyncadd [#allocation4], 4294966784 }
 0x887   :  { %1405 = vsyncpa [#allocation3], 1 }
 0x888   :  { %1406 = vsyncpa [#allocation6], 1 }
 0x889   :  { %1407 = vsyncpa [#allocation4], 1 }

</bundles_post_ra>
